<compile_context>
chip_gen: v7x
topology: tpu7x:2x2x1
jax: 0.10.0
libtpu: 0.0.40
codegen_flags: <defaults>
</compile_context>

<pallas_src>
import functools

import jax
import jax.numpy as jnp
from jax.experimental import pallas as pl
from jax.experimental.pallas import tpu as pltpu


def _multicha_kernel(x_ref, wtap_ref, scale_ref, shift_ref, wproj_ref, o_ref,
                     *, H, W, C):
    # x_ref: [H+2, W+2, C]  (zero-padded NHWC; batch dim squeezed by the BlockSpec)
    x = x_ref[...]

    # Grouped 3x3 conv == sum over the 9 taps of (shifted x) @ W_tap, where W_tap is the
    # dense block-diagonal [C, C] channel-mixing matrix for that tap.  Each dot is a
    # full-width MXU push ([256, C] x [C, C]) accumulated in f32.
    acc = jnp.zeros((H * W, C), dtype=jnp.float32)
    for t in range(9):                      # static unroll: 9 MXU matmuls
        di, dj = t // 3, t % 3
        xs = x[di:di + H, dj:dj + W, :].reshape(H * W, C)
        acc = acc + jnp.dot(xs, wtap_ref[t], preferred_element_type=jnp.float32)

    # Folded BatchNorm + ReLU in f32 on the VPU.  Dropout(p=0) is identity.
    y = acc * scale_ref[...] + shift_ref[...]      # scale/shift broadcast over rows
    y = jnp.maximum(y, 0.0)

    # 1x1 projection conv == [H*W, C] @ [C, C] matmul.
    out = jnp.dot(y.astype(wproj_ref.dtype), wproj_ref[...],
                  preferred_element_type=jnp.float32)

    # Lane-dense store: last dim is C (128 lanes in the example).
    o_ref[...] = out.reshape(H, W, C).astype(o_ref.dtype)


def multicha_forward(x_nchw, conv_w, gamma, beta, run_mean, run_var, proj_w,
                     *, num_heads, eps=1e-6, compute_dtype=jnp.bfloat16):
    """MultiCHA forward.  x_nchw: [B, C, H, W] (PyTorch layout)."""
    B, C, H, W = x_nchw.shape
    nh = num_heads                      # channels per group
    groups = C // nh
    assert groups * nh == C

    # ---- wrapper-side layout plumbing (no compute hoisting) ----
    # NHWC + spatial zero padding of 1 (Conv2d padding=1).
    x = jnp.transpose(x_nchw, (0, 2, 3, 1))
    x_pad = jnp.pad(x, ((0, 0), (1, 1), (1, 1), (0, 0))).astype(compute_dtype)

    # Dense block-diagonal per-tap channel-mixing matrices, laid out [ic, oc]:
    #   w_taps[kh*3+kw, g*nh+ic, g*nh+oc] = conv_w[g*nh+oc, ic, kh, kw]
    w5 = conv_w.reshape(groups, nh, nh, 3, 3)        # [g, oc_in_g, ic_in_g, kh, kw]
    w5 = jnp.transpose(w5, (3, 4, 0, 2, 1))          # [kh, kw, g, ic, oc]
    eye_g = jnp.eye(groups, dtype=conv_w.dtype)
    dense = w5[:, :, :, :, None, :] * eye_g[None, None, :, None, :, None]
    w_taps = dense.reshape(9, C, C).astype(compute_dtype)

    # Fold BatchNorm (inference, running stats) into per-channel scale & shift (f32).
    inv_std = jax.lax.rsqrt(run_var.astype(jnp.float32) + eps)
    scale = (gamma.astype(jnp.float32) * inv_std).reshape(1, C)
    shift = (beta.astype(jnp.float32)
             - run_mean.astype(jnp.float32) * scale[0]).reshape(1, C)

    # 1x1 projection conv weight, pre-transposed to [in, out].
    wproj_t = jnp.transpose(proj_w[:, :, 0, 0], (1, 0)).astype(compute_dtype)

    kernel = functools.partial(_multicha_kernel, H=H, W=W, C=C)
    Hp, Wp = H + 2, W + 2

    out_nhwc = pl.pallas_call(
        kernel,
        out_shape=jax.ShapeDtypeStruct((B, H, W, C), jnp.float32),
        grid_spec=pltpu.PrefetchScalarGridSpec(
            num_scalar_prefetch=0,
            grid=(B,),
            in_specs=[
                pl.BlockSpec((None, Hp, Wp, C), lambda b: (b, 0, 0, 0)),  # x (padded)
                pl.BlockSpec((9, C, C), lambda b: (0, 0, 0)),             # conv taps
                pl.BlockSpec((1, C), lambda b: (0, 0)),                   # BN scale
                pl.BlockSpec((1, C), lambda b: (0, 0)),                   # BN shift
                pl.BlockSpec((C, C), lambda b: (0, 0)),                   # proj W^T
            ],
            out_specs=pl.BlockSpec((None, H, W, C), lambda b: (b, 0, 0, 0)),
        ),
        compiler_params=pltpu.CompilerParams(
            dimension_semantics=("parallel",)),
    )(x_pad, w_taps, scale, shift, wproj_t)

    return jnp.transpose(out_nhwc, (0, 3, 1, 2))     # back to NCHW


def multicha_reference(x_nchw, conv_w, gamma, beta, run_mean, run_var, proj_w,
                       *, num_heads, eps=1e-6):
    """Pure-JAX (XLA) reference of the PyTorch module forward."""
    C = x_nchw.shape[1]
    groups = C // num_heads
    y = jax.lax.conv_general_dilated(
        x_nchw, conv_w, window_strides=(1, 1), padding=((1, 1), (1, 1)),
        dimension_numbers=("NCHW", "OIHW", "NCHW"),
        feature_group_count=groups, precision=jax.lax.Precision.HIGHEST)
    bn_scale = gamma * jax.lax.rsqrt(run_var + eps)
    y = (y - run_mean[None, :, None, None]) * bn_scale[None, :, None, None] \
        + beta[None, :, None, None]
    y = jnp.maximum(y, 0.0)
    y = jax.lax.conv_general_dilated(
        y, proj_w, window_strides=(1, 1), padding="VALID",
        dimension_numbers=("NCHW", "OIHW", "NCHW"),
        precision=jax.lax.Precision.HIGHEST)
    return y


if __name__ == "__main__":
    # Small shapes consistent with the module; C=128 keeps the channel axis lane-dense.
    B, C, H, W = 2, 128, 16, 16
    num_heads = 8                       # -> groups = 16, 8 channels per group
    nh = num_heads

    key = jax.random.PRNGKey(0)
    k_x, k_c, k_g, k_b, k_m, k_v, k_p = jax.random.split(key, 7)

    x = jax.random.normal(k_x, (B, C, H, W), dtype=jnp.float32)

    conv_w = jax.random.normal(k_c, (C, nh, 3, 3), jnp.float32) / (9 * nh) ** 0.5
    gamma = 1.0 + 0.1 * jax.random.normal(k_g, (C,), jnp.float32)
    beta = 0.1 * jax.random.normal(k_b, (C,), jnp.float32)
    run_mean = 0.1 * jax.random.normal(k_m, (C,), jnp.float32)
    run_var = jax.random.uniform(k_v, (C,), jnp.float32, 0.5, 1.5)
    proj_w = jax.random.normal(k_p, (C, C, 1, 1), jnp.float32) / C ** 0.5

    ref = multicha_reference(x, conv_w, gamma, beta, run_mean, run_var, proj_w,
                             num_heads=num_heads)

    # f32 path (semantics check).
    out_f32 = multicha_forward(x, conv_w, gamma, beta, run_mean, run_var, proj_w,
                               num_heads=num_heads, compute_dtype=jnp.float32)
    out_f32 = jax.block_until_ready(out_f32)
    assert out_f32.shape == (B, C, H, W)
    assert jnp.allclose(out_f32, ref, atol=5e-2, rtol=5e-2), "f32 mismatch vs reference"

    # bf16 MXU operands + f32 accumulation (recommended perf configuration on v6e/v7x).
    out_bf16 = multicha_forward(x, conv_w, gamma, beta, run_mean, run_var, proj_w,
                                num_heads=num_heads, compute_dtype=jnp.bfloat16)
    out_bf16 = jax.block_until_ready(out_bf16)
    assert jnp.allclose(out_bf16, ref, atol=7e-2, rtol=7e-2), "bf16 mismatch vs reference"

    print("KERNEL_OK")
</pallas_src>

<mosaic_0001>
module attributes {stable_mosaic.version = 11 : i64} {
  func.func @_multicha_kernel(%arg0: i32, %arg1: memref<1x18x18x128xf32, #tpu.memory_space<vmem>>, %arg2: memref<9x128x128xf32, #tpu.memory_space<vmem>>, %arg3: memref<1x128xf32, #tpu.memory_space<vmem>>, %arg4: memref<1x128xf32, #tpu.memory_space<vmem>>, %arg5: memref<128x128xf32, #tpu.memory_space<vmem>>, %arg6: memref<1x16x16x128xf32, #tpu.memory_space<vmem>>) attributes {dimension_semantics = [#tpu.dimension_semantics<parallel>], iteration_bounds = array<i64: 2>, scalar_prefetch = 0 : i64, scratch_operands = 0 : i64, tpu.core_type = #tpu.core_type<tc>, window_params = [{transform_indices = @transform_0, window_bounds = array<i64: 1, 18, 18, 128>}, {pipeline_mode = #tpu.pipeline_mode<synchronous>, transform_indices = @transform_1, window_bounds = array<i64: 9, 128, 128>}, {pipeline_mode = #tpu.pipeline_mode<synchronous>, transform_indices = @transform_2, window_bounds = array<i64: 1, 128>}, {pipeline_mode = #tpu.pipeline_mode<synchronous>, transform_indices = @transform_3, window_bounds = array<i64: 1, 128>}, {pipeline_mode = #tpu.pipeline_mode<synchronous>, transform_indices = @transform_4, window_bounds = array<i64: 128, 128>}, {transform_indices = @transform_5, window_bounds = array<i64: 1, 16, 16, 128>}]} {
    %c0 = arith.constant 0 : index
    %c0_0 = arith.constant 0 : index
    %c0_1 = arith.constant 0 : index
    %c0_2 = arith.constant 0 : index
    %0 = vector.load %arg1[%c0, %c0_0, %c0_1, %c0_2] : memref<1x18x18x128xf32, #tpu.memory_space<vmem>>, vector<1x18x18x128xf32>
    %1 = vector.shape_cast %0 : vector<1x18x18x128xf32> to vector<18x18x128xf32>
    %cst = arith.constant 0.000000e+00 : f32
    %2 = vector.broadcast %cst : f32 to vector<256x128xf32>
    %3 = vector.extract_strided_slice %1 {offsets = [0, 0, 0], sizes = [16, 16, 128], strides = [1, 1, 1]} : vector<18x18x128xf32> to vector<16x16x128xf32>
    %4 = vector.shape_cast %3 : vector<16x16x128xf32> to vector<256x128xf32>
    %c0_3 = arith.constant 0 : index
    %c0_4 = arith.constant 0 : index
    %c0_5 = arith.constant 0 : index
    %5 = vector.load %arg2[%c0_3, %c0_4, %c0_5] : memref<9x128x128xf32, #tpu.memory_space<vmem>>, vector<1x128x128xf32>
    %6 = vector.shape_cast %5 : vector<1x128x128xf32> to vector<128x128xf32>
    %cst_6 = arith.constant dense<0.000000e+00> : vector<256x128xf32>
    %7 = tpu.matmul %4, %6, %cst_6 {dimension_numbers = #tpu.dot_dimension_numbers<[1], [0], [0], [1], [0, 0, 1, 1], [], []>} : vector<256x128xf32>, vector<128x128xf32>, vector<256x128xf32> -> vector<256x128xf32>
    %8 = arith.addf %2, %7 : vector<256x128xf32>
    %9 = vector.extract_strided_slice %1 {offsets = [0, 1, 0], sizes = [16, 16, 128], strides = [1, 1, 1]} : vector<18x18x128xf32> to vector<16x16x128xf32>
    %10 = vector.shape_cast %9 : vector<16x16x128xf32> to vector<256x128xf32>
    %c1 = arith.constant 1 : index
    %c0_7 = arith.constant 0 : index
    %c0_8 = arith.constant 0 : index
    %11 = vector.load %arg2[%c1, %c0_7, %c0_8] : memref<9x128x128xf32, #tpu.memory_space<vmem>>, vector<1x128x128xf32>
    %12 = vector.shape_cast %11 : vector<1x128x128xf32> to vector<128x128xf32>
    %cst_9 = arith.constant dense<0.000000e+00> : vector<256x128xf32>
    %13 = tpu.matmul %10, %12, %cst_9 {dimension_numbers = #tpu.dot_dimension_numbers<[1], [0], [0], [1], [0, 0, 1, 1], [], []>} : vector<256x128xf32>, vector<128x128xf32>, vector<256x128xf32> -> vector<256x128xf32>
    %14 = arith.addf %8, %13 : vector<256x128xf32>
    %15 = vector.extract_strided_slice %1 {offsets = [0, 2, 0], sizes = [16, 16, 128], strides = [1, 1, 1]} : vector<18x18x128xf32> to vector<16x16x128xf32>
    %16 = vector.shape_cast %15 : vector<16x16x128xf32> to vector<256x128xf32>
    %c2 = arith.constant 2 : index
    %c0_10 = arith.constant 0 : index
    %c0_11 = arith.constant 0 : index
    %17 = vector.load %arg2[%c2, %c0_10, %c0_11] : memref<9x128x128xf32, #tpu.memory_space<vmem>>, vector<1x128x128xf32>
    %18 = vector.shape_cast %17 : vector<1x128x128xf32> to vector<128x128xf32>
    %cst_12 = arith.constant dense<0.000000e+00> : vector<256x128xf32>
    %19 = tpu.matmul %16, %18, %cst_12 {dimension_numbers = #tpu.dot_dimension_numbers<[1], [0], [0], [1], [0, 0, 1, 1], [], []>} : vector<256x128xf32>, vector<128x128xf32>, vector<256x128xf32> -> vector<256x128xf32>
    %20 = arith.addf %14, %19 : vector<256x128xf32>
    %21 = vector.extract_strided_slice %1 {offsets = [1, 0, 0], sizes = [16, 16, 128], strides = [1, 1, 1]} : vector<18x18x128xf32> to vector<16x16x128xf32>
    %22 = vector.shape_cast %21 : vector<16x16x128xf32> to vector<256x128xf32>
    %c3 = arith.constant 3 : index
    %c0_13 = arith.constant 0 : index
    %c0_14 = arith.constant 0 : index
    %23 = vector.load %arg2[%c3, %c0_13, %c0_14] : memref<9x128x128xf32, #tpu.memory_space<vmem>>, vector<1x128x128xf32>
    %24 = vector.shape_cast %23 : vector<1x128x128xf32> to vector<128x128xf32>
    %cst_15 = arith.constant dense<0.000000e+00> : vector<256x128xf32>
    %25 = tpu.matmul %22, %24, %cst_15 {dimension_numbers = #tpu.dot_dimension_numbers<[1], [0], [0], [1], [0, 0, 1, 1], [], []>} : vector<256x128xf32>, vector<128x128xf32>, vector<256x128xf32> -> vector<256x128xf32>
    %26 = arith.addf %20, %25 : vector<256x128xf32>
    %27 = vector.extract_strided_slice %1 {offsets = [1, 1, 0], sizes = [16, 16, 128], strides = [1, 1, 1]} : vector<18x18x128xf32> to vector<16x16x128xf32>
    %28 = vector.shape_cast %27 : vector<16x16x128xf32> to vector<256x128xf32>
    %c4 = arith.constant 4 : index
    %c0_16 = arith.constant 0 : index
    %c0_17 = arith.constant 0 : index
    %29 = vector.load %arg2[%c4, %c0_16, %c0_17] : memref<9x128x128xf32, #tpu.memory_space<vmem>>, vector<1x128x128xf32>
    %30 = vector.shape_cast %29 : vector<1x128x128xf32> to vector<128x128xf32>
    %cst_18 = arith.constant dense<0.000000e+00> : vector<256x128xf32>
    %31 = tpu.matmul %28, %30, %cst_18 {dimension_numbers = #tpu.dot_dimension_numbers<[1], [0], [0], [1], [0, 0, 1, 1], [], []>} : vector<256x128xf32>, vector<128x128xf32>, vector<256x128xf32> -> vector<256x128xf32>
    %32 = arith.addf %26, %31 : vector<256x128xf32>
    %33 = vector.extract_strided_slice %1 {offsets = [1, 2, 0], sizes = [16, 16, 128], strides = [1, 1, 1]} : vector<18x18x128xf32> to vector<16x16x128xf32>
    %34 = vector.shape_cast %33 : vector<16x16x128xf32> to vector<256x128xf32>
    %c5 = arith.constant 5 : index
    %c0_19 = arith.constant 0 : index
    %c0_20 = arith.constant 0 : index
    %35 = vector.load %arg2[%c5, %c0_19, %c0_20] : memref<9x128x128xf32, #tpu.memory_space<vmem>>, vector<1x128x128xf32>
    %36 = vector.shape_cast %35 : vector<1x128x128xf32> to vector<128x128xf32>
    %cst_21 = arith.constant dense<0.000000e+00> : vector<256x128xf32>
    %37 = tpu.matmul %34, %36, %cst_21 {dimension_numbers = #tpu.dot_dimension_numbers<[1], [0], [0], [1], [0, 0, 1, 1], [], []>} : vector<256x128xf32>, vector<128x128xf32>, vector<256x128xf32> -> vector<256x128xf32>
    %38 = arith.addf %32, %37 : vector<256x128xf32>
    %39 = vector.extract_strided_slice %1 {offsets = [2, 0, 0], sizes = [16, 16, 128], strides = [1, 1, 1]} : vector<18x18x128xf32> to vector<16x16x128xf32>
    %40 = vector.shape_cast %39 : vector<16x16x128xf32> to vector<256x128xf32>
    %c6 = arith.constant 6 : index
    %c0_22 = arith.constant 0 : index
    %c0_23 = arith.constant 0 : index
    %41 = vector.load %arg2[%c6, %c0_22, %c0_23] : memref<9x128x128xf32, #tpu.memory_space<vmem>>, vector<1x128x128xf32>
    %42 = vector.shape_cast %41 : vector<1x128x128xf32> to vector<128x128xf32>
    %cst_24 = arith.constant dense<0.000000e+00> : vector<256x128xf32>
    %43 = tpu.matmul %40, %42, %cst_24 {dimension_numbers = #tpu.dot_dimension_numbers<[1], [0], [0], [1], [0, 0, 1, 1], [], []>} : vector<256x128xf32>, vector<128x128xf32>, vector<256x128xf32> -> vector<256x128xf32>
    %44 = arith.addf %38, %43 : vector<256x128xf32>
    %45 = vector.extract_strided_slice %1 {offsets = [2, 1, 0], sizes = [16, 16, 128], strides = [1, 1, 1]} : vector<18x18x128xf32> to vector<16x16x128xf32>
    %46 = vector.shape_cast %45 : vector<16x16x128xf32> to vector<256x128xf32>
    %c7 = arith.constant 7 : index
    %c0_25 = arith.constant 0 : index
    %c0_26 = arith.constant 0 : index
    %47 = vector.load %arg2[%c7, %c0_25, %c0_26] : memref<9x128x128xf32, #tpu.memory_space<vmem>>, vector<1x128x128xf32>
    %48 = vector.shape_cast %47 : vector<1x128x128xf32> to vector<128x128xf32>
    %cst_27 = arith.constant dense<0.000000e+00> : vector<256x128xf32>
    %49 = tpu.matmul %46, %48, %cst_27 {dimension_numbers = #tpu.dot_dimension_numbers<[1], [0], [0], [1], [0, 0, 1, 1], [], []>} : vector<256x128xf32>, vector<128x128xf32>, vector<256x128xf32> -> vector<256x128xf32>
    %50 = arith.addf %44, %49 : vector<256x128xf32>
    %51 = vector.extract_strided_slice %1 {offsets = [2, 2, 0], sizes = [16, 16, 128], strides = [1, 1, 1]} : vector<18x18x128xf32> to vector<16x16x128xf32>
    %52 = vector.shape_cast %51 : vector<16x16x128xf32> to vector<256x128xf32>
    %c8 = arith.constant 8 : index
    %c0_28 = arith.constant 0 : index
    %c0_29 = arith.constant 0 : index
    %53 = vector.load %arg2[%c8, %c0_28, %c0_29] : memref<9x128x128xf32, #tpu.memory_space<vmem>>, vector<1x128x128xf32>
    %54 = vector.shape_cast %53 : vector<1x128x128xf32> to vector<128x128xf32>
    %cst_30 = arith.constant dense<0.000000e+00> : vector<256x128xf32>
    %55 = tpu.matmul %52, %54, %cst_30 {dimension_numbers = #tpu.dot_dimension_numbers<[1], [0], [0], [1], [0, 0, 1, 1], [], []>} : vector<256x128xf32>, vector<128x128xf32>, vector<256x128xf32> -> vector<256x128xf32>
    %56 = arith.addf %50, %55 : vector<256x128xf32>
    %c0_31 = arith.constant 0 : index
    %c0_32 = arith.constant 0 : index
    %57 = vector.load %arg3[%c0_31, %c0_32] : memref<1x128xf32, #tpu.memory_space<vmem>>, vector<1x128xf32>
    %58 = vector.broadcast %57 : vector<1x128xf32> to vector<256x128xf32>
    %59 = arith.mulf %56, %58 : vector<256x128xf32>
    %c0_33 = arith.constant 0 : index
    %c0_34 = arith.constant 0 : index
    %60 = vector.load %arg4[%c0_33, %c0_34] : memref<1x128xf32, #tpu.memory_space<vmem>>, vector<1x128xf32>
    %61 = vector.broadcast %60 : vector<1x128xf32> to vector<256x128xf32>
    %62 = arith.addf %59, %61 : vector<256x128xf32>
    %cst_35 = arith.constant 0.000000e+00 : f32
    %63 = vector.broadcast %cst_35 : f32 to vector<256x128xf32>
    %64 = arith.maximumf %62, %63 : vector<256x128xf32>
    %c0_36 = arith.constant 0 : index
    %c0_37 = arith.constant 0 : index
    %65 = vector.load %arg5[%c0_36, %c0_37] : memref<128x128xf32, #tpu.memory_space<vmem>>, vector<128x128xf32>
    %cst_38 = arith.constant dense<0.000000e+00> : vector<256x128xf32>
    %66 = tpu.matmul %64, %65, %cst_38 {dimension_numbers = #tpu.dot_dimension_numbers<[1], [0], [0], [1], [0, 0, 1, 1], [], []>} : vector<256x128xf32>, vector<128x128xf32>, vector<256x128xf32> -> vector<256x128xf32>
    %67 = vector.shape_cast %66 : vector<256x128xf32> to vector<16x16x128xf32>
    %c0_39 = arith.constant 0 : index
    %c0_40 = arith.constant 0 : index
    %c0_41 = arith.constant 0 : index
    %c0_42 = arith.constant 0 : index
    %68 = vector.load %arg6[%c0_39, %c0_40, %c0_41, %c0_42] : memref<1x16x16x128xf32, #tpu.memory_space<vmem>>, vector<1x16x16x128xf32>
    %69 = vector.shape_cast %68 : vector<1x16x16x128xf32> to vector<16x16x128xf32>
    %70 = vector.shape_cast %67 : vector<16x16x128xf32> to vector<1x16x16x128xf32>
    tpu.vector_store %arg6[%c0_39, %c0_40, %c0_41, %c0_42], %70 {strides = array<i32>} : memref<1x16x16x128xf32, #tpu.memory_space<vmem>>, vector<1x16x16x128xf32>,
    return
  }
  func.func @transform_0(%arg0: i32) -> (i32, i32, i32, i32) {
    %c0_i32 = arith.constant 0 : i32
    %c0_i32_0 = arith.constant 0 : i32
    %c0_i32_1 = arith.constant 0 : i32
    %c0_i32_2 = arith.constant 0 : i32
    return %arg0, %c0_i32, %c0_i32_0, %c0_i32_1 : i32, i32, i32, i32
  }
  func.func @transform_1(%arg0: i32) -> (i32, i32, i32) {
    %c0_i32 = arith.constant 0 : i32
    %c0_i32_0 = arith.constant 0 : i32
    %c0_i32_1 = arith.constant 0 : i32
    %c0_i32_2 = arith.constant 0 : i32
    return %c0_i32, %c0_i32_0, %c0_i32_1 : i32, i32, i32
  }
  func.func @transform_2(%arg0: i32) -> (i32, i32) {
    %c0_i32 = arith.constant 0 : i32
    %c0_i32_0 = arith.constant 0 : i32
    %c0_i32_1 = arith.constant 0 : i32
    return %c0_i32, %c0_i32_0 : i32, i32
  }
  func.func @transform_3(%arg0: i32) -> (i32, i32) {
    %c0_i32 = arith.constant 0 : i32
    %c0_i32_0 = arith.constant 0 : i32
    %c0_i32_1 = arith.constant 0 : i32
    return %c0_i32, %c0_i32_0 : i32, i32
  }
  func.func @transform_4(%arg0: i32) -> (i32, i32) {
    %c0_i32 = arith.constant 0 : i32
    %c0_i32_0 = arith.constant 0 : i32
    %c0_i32_1 = arith.constant 0 : i32
    return %c0_i32, %c0_i32_0 : i32, i32
  }
  func.func @transform_5(%arg0: i32) -> (i32, i32, i32, i32) {
    %c0_i32 = arith.constant 0 : i32
    %c0_i32_0 = arith.constant 0 : i32
    %c0_i32_1 = arith.constant 0 : i32
    %c0_i32_2 = arith.constant 0 : i32
    return %arg0, %c0_i32, %c0_i32_0, %c0_i32_1 : i32, i32, i32, i32
  }
}

</mosaic_0001>

<bundles_post_ra>
// kernel: tpu_custom_call.1
= control target key start
LH: loop header
LB: loop body
LE: loop exit
PB: predicated region body
PF: predicated region fallthrough
CT: control target
= control target key end

     0   :  { %10 = vsyncpa [#allocation3], 0  ;;  %s7160_s0 = inlined_call_operand.vmem [shape: f32[2,18,18,128], index: 0, kind: input, shape index: {}]   ;;  %s7161_s1 = inlined_call_operand.vmem [shape: f32[9,128,128], index: 1, kind: input, shape index: {}]   ;;  %s7162_s2 = inlined_call_operand.vmem [shape: f32[1,128], index: 2, kind: input, shape index: {}]   ;;  %s7163_s3 = inlined_call_operand.vmem [shape: f32[1,128], index: 3, kind: input, shape index: {}]   ;;  %s7164_s4 = inlined_call_operand.vmem [shape: f32[128,128], index: 4, kind: input, shape index: {}]   ;;  %s7165_s5 = inlined_call_operand.hbm [shape: f32[2,16,16,128], index: 5, kind: output, shape index: {}]  }
   0x1   :  { %12 = vsyncpa [#allocation3 + $0x1], 0  ;;  %s5611_s18 = smov 0   ;;  %s5613_s19 = smov 0  }
   0x2   :  { %s5615_s20 = smov 0   ;;  %s5617_s21 = smov 0  }
   0x3 LB: > { %s5632_s22 = sadd.s32 4294967295, %s5576_s21   ;;  %s3445_s23 = sadd.s32 4294967294, %s5576_s21   ;;  %s5576_s21 = sphi %s5617_s21, %s7300_s21   ;;  %s5572_s20 = sphi %s5615_s20, %s7299_s20   ;;  %s5568_s19 = sphi %s5613_s19, %s7298_s19   ;;  %s5564_s18 = sphi %s5611_s18, %s7297_s18  }
   0x4   : > { %s5636_s24 = sadd.s32 1, %s5576_s21   ;;  %s135_s25 = sadd.s32 1, %s5572_s20 }
   0x5   : > { %s132_s26 = ssub.s32 %s5576_s21, %s5636_s24  ;;  %p145_p0 = scmp.ne.s32.totalorder %s5572_s20, %s5568_s19 }
   0x6   : > { %p133_p1 = scmp.eq.s32.totalorder %s132_s26, 0  ;;  %p146_p2 = scmp.eq.s32.totalorder %s5632_s22, 1 }
   0x7   : > { %p151_p3 = scmp.ne.s32.totalorder %s5568_s19, %s5564_s18  ;;  %p152_p4 = scmp.eq.s32.totalorder %s3445_s23, 1 }
   0x8   : > { %s5647_s27 = scalar_select %p133_p1, %s5572_s20, %s135_s25  }
   0x9   : > { %p5649_p5 = por %p146_p2, %p145_p0  ;;  %p5653_p6 = por %p152_p4, %p151_p3 }
   0xa   : > { %p3448_p7 = scmp.ge.s32.totalorder %s5576_s21, 1  ;;  %p190_p8 = scmp.lt.s32.totalorder %s5576_s21, 3 }
   0xc   : > { %p191_p9 = pnand %p3448_p7, %p190_p8 }
   0xe   : > { %194 = sbr.rel (%p191_p9) target bundleno = 823 (0x337), region = 40 }
  0x15   : > { %v3451_v0 = vld [vmem:[%s7161_s1 + $0x80] sm:$0xff]  ;;  %v3452_v1 = vld [vmem:[%s7161_s1 + $0x88] sm:$0xff]  ;;  %p218_p10 = scmp.lt.s32.totalorder %s5632_s22, 1  ;;  %v3453_v5 = vld [vmem:[%s7161_s1 + $0x90] sm:$0xff]  ;;  %vm341_vm0 = vcmask 1046528   ;;  %vm921_vm1 = vcmask 1045504  }
  0x16   : > { %v3499_v2 = vld [vmem:[%s7161_s1 + $0x200] sm:$0xff]  ;;  %v4867_v3 = vpack.c.bf16 %v3452_v1, %v3451_v0  ;;  %v3500_v4 = vld [vmem:[%s7161_s1 + $0x208] sm:$0xff]  ;;  %v3454_v6 = vld [vmem:[%s7161_s1 + $0x98] sm:$0xff]  ;;  %s3586_s17 = sshll.u32 %s5632_s22, 12 }
  0x17   : > { %v4995_v7 = vpack.c.bf16 %v3500_v4, %v3499_v2  ;;  %v4871_v8 = vpack.c.bf16 %v3454_v6, %v3453_v5  ;;  %v3501_v9 = vld [vmem:[%s7161_s1 + $0x210] sm:$0xff]  ;;  %v3502_v10 = vld [vmem:[%s7161_s1 + $0x218] sm:$0xff]  ;;  %v3455_v11 = vld [vmem:[%s7161_s1 + $0xa0] sm:$0xff]  ;;  %s219_s7 = scalar_select %p218_p10, %s5632_s22, 1 }
  0x18   : > { %4868 = vmatprep.subr.bf16.mxu1 %v4867_v3  ;;  %v4999_v12 = vpack.c.bf16 %v3502_v10, %v3501_v9  ;;  %v3456_v13 = vld [vmem:[%s7161_s1 + $0xa8] sm:$0xff]  ;;  %v3503_v14 = vld [vmem:[%s7161_s1 + $0x220] sm:$0xff]  ;;  %v3457_v18 = vld [vmem:[%s7161_s1 + $0xb0] sm:$0xff]  ;;  %s7111_s30 = scalar_lea.hbm %s7165_s5, %s3586_s17 }
  0x19   : > { %v3504_v15 = vld [vmem:[%s7161_s1 + $0x228] sm:$0xff]  ;;  %4996 = vmatprep.subr.bf16.mxu0 %v4995_v7  ;;  %4870 = vmatpush3.bf16.msra.mxu1 %v4867_v3  ;;  %s5443_s14 = smul.u32 432, %s219_s7  ;;  %v4875_v16 = vpack.c.bf16 %v3456_v13, %v3455_v11  ;;  %v3458_v19 = vld [vmem:[%s7161_s1 + $0xb8] sm:$0xff]  ;;  %v3505_v20 = vld [vmem:[%s7161_s1 + $0x230] sm:$0xff]  ;;  %s5578_s7 = smov [#allocation2]  }
  0x1a   : > { %4998 = vmatpush3.bf16.msra.mxu0 %v4995_v7  ;;  %4872 = vmatprep.subr.bf16.mxu1 %v4871_v8  ;;  %v5003_v17 = vpack.c.bf16 %v3504_v15, %v3503_v14  ;;  %v3506_v21 = vld [vmem:[%s7161_s1 + $0x238] sm:$0xff]  ;;  %v4879_v22 = vpack.c.bf16 %v3458_v19, %v3457_v18  ;;  %v3459_v23 = vld [vmem:[%s7161_s1 + $0xc0] sm:$0xff]  ;;  %v3460_v24 = vld [vmem:[%s7161_s1 + $0xc8] sm:$0xff]  ;;  %s5518_s8 = sshll.u32 %s5578_s7, 4  ;;  %s5519_s8 = int_to_ptr.vmem [resolvable:$false] %s5518_s8 }
  0x1b   : > { %5000 = vmatprep.subr.bf16.mxu0 %v4999_v12  ;;  %s5712_s9 = scalar_lea.vmem %s7160_s0, %s5443_s14  ;;  %v5007_v25 = vpack.c.bf16 %v3506_v21, %v3505_v20  ;;  %v3507_v26 = vld [vmem:[%s7161_s1 + $0x240] sm:$0xff]  ;;  %v3508_v27 = vld [vmem:[%s7161_s1 + $0x248] sm:$0xff]  ;;  %v4883_v36 = vpack.c.bf16 %v3460_v24, %v3459_v23  ;;  %v3461_v38 = vld [vmem:[%s7161_s1 + $0xd0] sm:$0xff]  ;;  %s215_s14 = sand.u32 1, %s5568_s19  }
  0x1c   : > { %v5727_v28 = vld [vmem:[%s5712_s9] sm:$0xff]  ;;  %v5730_v29 = vld [vmem:[%s5712_s9 + $0x8] sm:$0xff]  ;;  %v5734_v31 = vld [vmem:[%s5712_s9 + $0x18] sm:$0xff]  ;;  %v5011_v37 = vpack.c.bf16 %v3508_v27, %v3507_v26  ;;  %s3449_s15 = sshll.u32 %s215_s14, 8  ;;  %s7119_s22 = scalar_lea.sflag [#allocation3], %s215_s14 }
  0x1d   : > { %4874 = vmatpush3.bf16.msra.mxu1 %v4871_v8  ;;  %v342_v30 = vrot.slane %v5727_v28, 1  ;;  %v5737_v32 = vld [vmem:[%s5712_s9 + $0x20] sm:$0xff]  ;;  %v343_v33 = vrot.slane %v5730_v29, 1  ;;  %v347_v34 = vrot.slane %v5734_v31, 1  ;;  %v3462_v39 = vld [vmem:[%s7161_s1 + $0xd8] sm:$0xff]  ;;  %v3509_v42 = vld [vmem:[%s7161_s1 + $0x250] sm:$0xff] }
  0x1e   : > { %5002 = vmatpush3.bf16.msra.mxu0 %v4999_v12  ;;  %4876 = vmatprep.subr.bf16.mxu1 %v4875_v16  ;;  %v348_v35 = vrot.slane %v5737_v32, 1  ;;  %v3510_v43 = vld [vmem:[%s7161_s1 + $0x258] sm:$0xff]  ;;  %v4887_v44 = vpack.c.bf16 %v3462_v39, %v3461_v38  ;;  %v3463_v46 = vld [vmem:[%s7161_s1 + $0xe0] sm:$0xff]  ;;  %v3464_v47 = vld [vmem:[%s7161_s1 + $0xe8] sm:$0xff]  ;;  %s7074_s16 = scalar_lea.vmem [#allocation2], %s3449_s15  ;;  %s5520_s10 = scalar_lea.vmem %s5519_s8, 8192 }
  0x1f   : > { %5004 = vmatprep.subr.bf16.mxu0 %v5003_v17  ;;  %v344_v40 = vsel %vm341_vm0, %v342_v30, %v343_v33  ;;  %v5015_v45 = vpack.c.bf16 %v3510_v43, %v3509_v42  ;;  %v3511_v48 = vld [vmem:[%s7161_s1 + $0x260] sm:$0xff]  ;;  %v3512_v49 = vld [vmem:[%s7161_s1 + $0x268] sm:$0xff]  ;;  %v4891_v50 = vpack.c.bf16 %v3464_v47, %v3463_v46  ;;  %v3465_v52 = vld [vmem:[%s7161_s1 + $0xf0] sm:$0xff]  ;;  %s3383_s23 = sshll.u32 %s7074_s16, 4  ;;  %s7113_s23 = int_to_ptr.vmem [resolvable:$true] %s3383_s23 }
  0x20   : > { %v5754_v41 = vsel %vm341_vm0, %v347_v34, %v348_v35  ;;  %4099 = vmatprep.mubr.f32.mxu1 %v344_v40  ;;  %v5019_v51 = vpack.c.bf16 %v3512_v49, %v3511_v48  ;;  %v3466_v53 = vld [vmem:[%s7161_s1 + $0xf8] sm:$0xff]  ;;  %v3513_v54 = vld [vmem:[%s7161_s1 + $0x270] sm:$0xff]  ;;  %v3515_v58 = vld [vmem:[%s7161_s1 + $0x280] sm:$0xff]  ;;  %s5514_s6 = scalar_lea.vmem %s7113_s23, 4096  ;;  %p5521_p0 = scmp.lt.s32.totalorder %s7113_s23, %s5519_s8 }
  0x21   : > { %4878 = vmatpush3.bf16.msra.mxu1 %v4875_v16  ;;  %4419 = vmatprep.mubr.f32.mxu0 %v5754_v41  ;;  %v3514_v55 = vld [vmem:[%s7161_s1 + $0x278] sm:$0xff]  ;;  %v4895_v56 = vpack.c.bf16 %v3466_v53, %v3465_v52  ;;  %v5788_v57 = vld [vmem:[%s5712_s9 + $0x10] sm:$0x3]  ;;  %v5794_v60 = vld [vmem:[%s5712_s9 + $0x28] sm:$0x3]  ;;  %p5515_p11 = scmp.ne.s32.totalorder %s7113_s23, %s5514_s6  ;;  %p5522_p1 = scmp.lt.s32.totalorder %s5520_s10, %s5514_s6 }
  0x22   : > { %5006 = vmatpush3.bf16.msra.mxu0 %v5003_v17  ;;  %4880 = vmatprep.subr.bf16.mxu1 %v4879_v22  ;;  %7216 = vst [vmem:[#allocation5_spill] sm:$0xff] %v5788_v57  ;;  %v5023_v59 = vpack.c.bf16 %v3514_v55, %v3513_v54  ;;  %v277_v61 = vld [vmem:[%s7161_s1] sm:$0xff]  ;;  %v278_v62 = vld [vmem:[%s7161_s1 + $0x8] sm:$0xff]  ;;  %v5806_v0 = vld [vmem:[%s5712_s9 + $0x30] sm:$0xff]  ;;  %v345_v2 = vrot.slane %v5788_v57, 1  ;;  %v350_v3 = vrot.slane %v5794_v60, 1 }
  0x23   : > { %5008 = vmatprep.subr.bf16.mxu0 %v5007_v25  ;;  %v3516_v63 = vld [vmem:[%s7161_s1 + $0x288] sm:$0xff]  ;;  %v5809_v1 = vld [vmem:[%s5712_s9 + $0x38] sm:$0xff]  ;;  %v4899_v4 = vpack.c.bf16 %v278_v62, %v277_v61  ;;  %v352_v6 = vrot.slane %v5806_v0, 1  ;;  %v5816_v8 = vld [vmem:[%s5712_s9 + $0x40] sm:$0x3]  ;;  %p5516_p12 = pnand %p5515_p11, %p5649_p5  ;;  %p5523_p2 = por %p5522_p1, %p5521_p0 }
  0x24   : > { %v5027_v5 = vpack.c.bf16 %v3516_v63, %v3515_v58  ;;  %v353_v7 = vrot.slane %v5809_v1, 1  ;;  %v5819_v9 = vld [vmem:[%s5712_s9 + $0x48] sm:$0xff]  ;;  %v5822_v10 = vld [vmem:[%s5712_s9 + $0x50] sm:$0xff]  ;;  %v3518_v12 = vld [vmem:[%s7161_s1 + $0x298] sm:$0xff]  ;;  %v346_v13 = vsel %vm341_vm0, %v343_v33, %v345_v2  ;;  %v351_v16 = vsel %vm341_vm0, %v348_v35, %v350_v3 }
  0x25   : > { %4882 = vmatpush3.bf16.msra.mxu1 %v4879_v22  ;;  %v3517_v11 = vld [vmem:[%s7161_s1 + $0x290] sm:$0xff]  ;;  %v280_v15 = vld [vmem:[%s7161_s1 + $0x18] sm:$0xff]  ;;  %v355_v17 = vrot.slane %v5816_v8, 1  ;;  %v357_v19 = vrot.slane %v5819_v9, 1  ;;  %v358_v20 = vrot.slane %v5822_v10, 1  ;;  %v5852_v23 = vld [vmem:[%s5712_s9 + $0x60] sm:$0xff]  ;;  %p5517_p13 = pneg %p5516_p12 }
  0x26   : > { %5010 = vmatpush3.bf16.msra.mxu0 %v5007_v25  ;;  %4884 = vmatprep.subr.bf16.mxu1 %v4883_v36  ;;  %v279_v14 = vld [vmem:[%s7161_s1 + $0x10] sm:$0xff]  ;;  %v5844_v18 = vsel %vm341_vm0, %v352_v6, %v353_v7  ;;  %v5849_v21 = vld [vmem:[%s5712_s9 + $0x58] sm:$0x3]  ;;  %v5031_v22 = vpack.c.bf16 %v3518_v12, %v3517_v11  ;;  %v5855_v24 = vld [vmem:[%s5712_s9 + $0x68] sm:$0xff] }
  0x27   : > { %5012 = vmatprep.subr.bf16.mxu0 %v5011_v37  ;;  %7217 = vst [vmem:[#allocation6_spill] sm:$0xff] %v5844_v18  ;;  %v3519_v25 = vld [vmem:[%s7161_s1 + $0x2a0] sm:$0xff]  ;;  %v3520_v26 = vld [vmem:[%s7161_s1 + $0x2a8] sm:$0xff]  ;;  %v4903_v27 = vpack.c.bf16 %v280_v15, %v279_v14  ;;  %v5872_v34 = vsel %vm341_vm0, %v353_v7, %v355_v17  ;;  %v360_v35 = vrot.slane %v5849_v21, 1  ;;  %v363_v38 = vrot.slane %v5855_v24, 1  ;;  %v5884_v40 = vld [vmem:[%s5712_s9 + $0x78] sm:$0xff]  ;;  %p5524_p3 = pnand %p5523_p2, %p5517_p13 }
  0x28   : > { %v281_v30 = vld [vmem:[%s7161_s1 + $0x20] sm:$0xff]  ;;  %v282_v33 = vld [vmem:[%s7161_s1 + $0x28] sm:$0xff]  ;;  %7218 = vst [vmem:[#allocation7_spill] sm:$0xff] %v5872_v34  ;;  %v5881_v39 = vld [vmem:[%s5712_s9 + $0x70] sm:$0x3] }
  0x29   : > { %4886 = vmatpush3.bf16.msra.mxu1 %v4883_v36  ;;  %v5876_v36 = vsel %vm341_vm0, %v357_v19, %v358_v20  ;;  %v5887_v42 = vld [vmem:[%s5712_s9 + $0x80] sm:$0xff]  ;;  %v3521_v43 = vld [vmem:[%s7161_s1 + $0x2b0] sm:$0xff]  ;;  %v284_v47 = vld [vmem:[%s7161_s1 + $0x38] sm:$0xff]  ;;  %v5905_v48 = vsel %vm341_vm0, %v358_v20, %v360_v35  ;;  %v365_v49 = vrot.slane %v5881_v39, 1 }
  0x2a   : > { %5014 = vmatpush3.bf16.msra.mxu0 %v5011_v37  ;;  %4888 = vmatprep.subr.bf16.mxu1 %v4887_v44  ;;  %7219 = vst [vmem:[#allocation8_spill] sm:$0xff] %v5876_v36  ;;  %v362_v37 = vrot.slane %v5852_v23, 1  ;;  %v283_v46 = vld [vmem:[%s7161_s1 + $0x30] sm:$0xff]  ;;  %7220 = vst [vmem:[#allocation9_spill] sm:$0xff] %v5905_v48  ;;  %v368_v52 = vrot.slane %v5887_v42, 1  ;;  %v3523_v58 = vld [vmem:[%s7161_s1 + $0x2c0] sm:$0xff] }
  0x2b   : > { %5016 = vmatprep.subr.bf16.mxu0 %v5015_v45  ;;  %v5914_v53 = vld [vmem:[%s5712_s9 + $0x88] sm:$0x3]  ;;  %v5917_v54 = vld [vmem:[%s5712_s9 + $0x90] sm:$0xff]  ;;  %v4911_v61 = vpack.c.bf16 %v284_v47, %v283_v46  ;;  %v285_v62 = vld [vmem:[%s7161_s1 + $0x40] sm:$0xff]  ;;  %v5939_v2 = vsel %vm341_vm0, %v363_v38, %v365_v49 }
  0x2c   : > { %v286_v63 = vld [vmem:[%s7161_s1 + $0x48] sm:$0xff]  ;;  %7222 = vst [vmem:[#allocation11_spill] sm:$0xff] %v5939_v2  ;;  %v370_v3 = vrot.slane %v5914_v53, 1  ;;  %v5948_v7 = vld [vmem:[%s5712_s9 + $0xa0] sm:$0x3]  ;;  %v3525_v14 = vld [vmem:[%s7161_s1 + $0x2d0] sm:$0xff] }
  0x2d   : > { %4890 = vmatpush3.bf16.msra.mxu1 %v4887_v44  ;;  %v3522_v44 = vld [vmem:[%s7161_s1 + $0x2b8] sm:$0xff]  ;;  %v5951_v11 = vld [vmem:[%s5712_s9 + $0xa8] sm:$0xff]  ;;  %v287_v17 = vld [vmem:[%s7161_s1 + $0x50] sm:$0xff] }
  0x2e   : > { %5018 = vmatpush3.bf16.msra.mxu0 %v5015_v45  ;;  %4892 = vmatprep.subr.bf16.mxu1 %v4891_v50  ;;  %v4907_v45 = vpack.c.bf16 %v282_v33, %v281_v30  ;;  %v5039_v55 = vpack.c.bf16 %v3522_v44, %v3521_v43  ;;  %v3526_v15 = vld [vmem:[%s7161_s1 + $0x2d8] sm:$0xff]  ;;  %v5973_v20 = vsel %vm341_vm0, %v368_v52, %v370_v3  ;;  %v5985_v33 = vld [vmem:[%s5712_s9 + $0xc0] sm:$0xff]  ;;  %v6222_v57 = vld [vmem:[%s5712_s9 + $0x190] sm:$0x3] }
  0x2f   : > { %5020 = vmatprep.subr.bf16.mxu0 %v5019_v51  ;;  %v288_v19 = vld [vmem:[%s7161_s1 + $0x58] sm:$0xff]  ;;  %7224 = vst [vmem:[#allocation13_spill] sm:$0xff] %v5973_v20  ;;  %v5047_v35 = vpack.c.bf16 %v3526_v15, %v3525_v14  ;;  %v289_v44 = vld [vmem:[%s7161_s1 + $0x60] sm:$0xff]  ;;  %7246 = vst [vmem:[#allocation35_spill] sm:$0xff] %v6222_v57 }
  0x30   : > { %v5982_v30 = vld [vmem:[%s5712_s9 + $0xb8] sm:$0x3]  ;;  %v4919_v43 = vpack.c.bf16 %v288_v19, %v287_v17  ;;  %v6050_v19 = vld [vmem:[%s5712_s9 + $0xe8] sm:$0x3] }
  0x31   : > { %4894 = vmatpush3.bf16.msra.mxu1 %v4891_v50  ;;  %v5909_v50 = vsel %vm341_vm0, %v362_v37, %v363_v38  ;;  %v5989_v37 = vld [vmem:[%s5712_s9 + $0xc8] sm:$0xff]  ;;  %v3527_v38 = vld [vmem:[%s7161_s1 + $0x2e0] sm:$0xff]  ;;  %v380_v47 = vrot.slane %v5982_v30, 1  ;;  %v3530_v3 = vld [vmem:[%s7161_s1 + $0x2f8] sm:$0xff] }
  0x32   : > { %5022 = vmatpush3.bf16.msra.mxu0 %v5019_v51  ;;  %4896 = vmatprep.subr.bf16.mxu1 %v4895_v56  ;;  %7221 = vst [vmem:[#allocation10_spill] sm:$0xff] %v5909_v50  ;;  %v367_v51 = vrot.slane %v5884_v40, 1 }
  0x33   : > { %5024 = vmatprep.subr.bf16.mxu0 %v5023_v59 }
  0x35   : > { %4898 = vmatpush3.bf16.msra.mxu1 %v4895_v56  ;;  %v5921_v56 = vld [vmem:[%s5712_s9 + $0x98] sm:$0xff] }
  0x36   : > { %5026 = vmatpush3.bf16.msra.mxu0 %v5023_v59  ;;  %4900 = vmatprep.subr.bf16.mxu1 %v4899_v4  ;;  %v3524_v59 = vld [vmem:[%s7161_s1 + $0x2c8] sm:$0xff]  ;;  %v373_v6 = vrot.slane %v5921_v56, 1 }
  0x37   : > { %5028 = vmatprep.subr.bf16.mxu0 %v5027_v5  ;;  %v5043_v12 = vpack.c.bf16 %v3524_v59, %v3523_v58  ;;  %v6019_v58 = vld [vmem:[%s5712_s9 + $0xd8] sm:$0xff] }
  0x38   : > { %4100 = vmatmul.mubr.f32.vlgmr.msra.gmra.mrb[0].mxu1 %v346_v13  ;;  %v5955_v13 = vld [vmem:[%s5712_s9 + $0xb0] sm:$0xff] }
  0x39   : > { %4420 = vmatmul.mubr.f32.vlgmr.msra.gmra.mrb[0].mxu0 %v351_v16  ;;  %4102 = vmatprep.mubr.f32.mxu1 %v5754_v41  ;;  %v5035_v41 = vpack.c.bf16 %v3520_v26, %v3519_v25  ;;  %v377_v26 = vrot.slane %v5951_v11, 1 }
  0x3a   : > { %5030 = vmatpush3.bf16.msra.mxu0 %v5027_v5  ;;  %4422 = vmatprep.mubr.f32.mxu0 %v5844_v18  ;;  %v372_v5 = vrot.slane %v5917_v54, 1 }
  0x3b   : > { %5032 = vmatprep.subr.bf16.mxu0 %v5031_v22  ;;  %4902 = vmatpush3.bf16.msra.mxu1 %v4899_v4  ;;  %v5943_v4 = vsel %vm341_vm0, %v367_v51, %v368_v52  ;;  %v382_v51 = vrot.slane %v5985_v33, 1  ;;  %v383_v52 = vrot.slane %v5989_v37, 1 }
  0x3c   : > { %4103 = vmatmul.mubr.f32.gmra.mrb[2].mxu1 %v351_v16  ;;  %4904 = vmatprep.subr.bf16.mxu1 %v4903_v27  ;;  %7223 = vst [vmem:[#allocation12_spill] sm:$0xff] %v5943_v4  ;;  %v4915_v16 = vpack.c.bf16 %v286_v63, %v285_v62  ;;  %v5977_v25 = vsel %vm341_vm0, %v372_v5, %v373_v6  ;;  %v3529_v63 = vld [vmem:[%s7161_s1 + $0x2f0] sm:$0xff] }
  0x3d   : > { %4423 = vmatmul.mubr.f32.gmra.mrb[2].mxu0 %v5872_v34  ;;  %4105 = vmatprep.mubr.f32.mxu1 %v5844_v18  ;;  %7225 = vst [vmem:[#allocation14_spill] sm:$0xff] %v5977_v25  ;;  %v291_v5 = vld [vmem:[%s7161_s1 + $0x70] sm:$0xff]  ;;  %v6045_v15 = vsel %vm341_vm0, %v382_v51, %v383_v52 }
  0x3e   : > { %4425 = vmatprep.mubr.f32.mxu0 %v5876_v36  ;;  %5034 = vmatpush3.bf16.msra.mxu0 %v5031_v22  ;;  %v375_v22 = vrot.slane %v5948_v7, 1  ;;  %7229 = vst [vmem:[#allocation18_spill] sm:$0xff] %v6045_v15 }
  0x3f   : > { %5036 = vmatprep.subr.bf16.mxu0 %v5035_v41  ;;  %4906 = vmatpush3.bf16.msra.mxu1 %v4903_v27  ;;  %v378_v27 = vrot.slane %v5955_v13, 1 }
  0x40   : > { %4106 = vmatmul.mubr.f32.gmra.mrb[4].mxu1 %v5872_v34  ;;  %4908 = vmatprep.subr.bf16.mxu1 %v4907_v45  ;;  %v6007_v46 = vsel %vm341_vm0, %v373_v6, %v375_v22  ;;  %v292_v6 = vld [vmem:[%s7161_s1 + $0x78] sm:$0xff]  ;;  %v6053_v22 = vld [vmem:[%s5712_s9 + $0xf0] sm:$0xff]  ;;  %v6207_v34 = vld [vmem:[%s5712_s9 + $0x188] sm:$0xff] }
  0x41   : > { %4426 = vmatmul.mubr.f32.gmra.mrb[4].mxu0 %v5905_v48  ;;  %4108 = vmatprep.mubr.f32.mxu1 %v5876_v36  ;;  %7226 = vst [vmem:[#allocation15_spill] sm:$0xff] %v6007_v46  ;;  %v6011_v49 = vsel %vm341_vm0, %v377_v26, %v378_v27  ;;  %v5055_v26 = vpack.c.bf16 %v3530_v3, %v3529_v63  ;;  %v392_v63 = vrot.slane %v6053_v22, 1  ;;  %v6200_v36 = vld [vmem:[%s5712_s9 + $0x178] sm:$0x3]  ;;  %7243 = vst [vmem:[#allocation32_spill] sm:$0xff] %v6207_v34 }
  0x42   : > { %4428 = vmatprep.mubr.f32.mxu0 %v5909_v50  ;;  %5038 = vmatpush3.bf16.msra.mxu0 %v5035_v41  ;;  %v3528_v41 = vld [vmem:[%s7161_s1 + $0x2e8] sm:$0xff]  ;;  %7227 = vst [vmem:[#allocation16_spill] sm:$0xff] %v6011_v49  ;;  %v1586_v18 = vrot.slane %v6207_v34, 1  ;;  %v928_v34 = vrot.slane %v5737_v32, 2 }
  0x43   : > { %5040 = vmatprep.subr.bf16.mxu0 %v5039_v55  ;;  %4910 = vmatpush3.bf16.msra.mxu1 %v4907_v45  ;;  %v290_v45 = vld [vmem:[%s7161_s1 + $0x68] sm:$0xff]  ;;  %v5051_v59 = vpack.c.bf16 %v3528_v41, %v3527_v38  ;;  %v3531_v38 = vld [vmem:[%s7161_s1 + $0x300] sm:$0xff] }
  0x44   : > { %4109 = vmatmul.mubr.f32.gmra.mrb[6].mxu1 %v5905_v48  ;;  %4912 = vmatprep.subr.bf16.mxu1 %v4911_v61  ;;  %v4923_v62 = vpack.c.bf16 %v290_v45, %v289_v44  ;;  %v3532_v41 = vld [vmem:[%s7161_s1 + $0x308] sm:$0xff] }
  0x45   : > { %4429 = vmatmul.mubr.f32.gmra.mrb[6].mxu0 %v5939_v2  ;;  %4111 = vmatprep.mubr.f32.mxu1 %v5909_v50  ;;  %v3468_v44 = vld [vmem:[%s7161_s1 + $0x108] sm:$0xff] }
  0x46   : > { %4431 = vmatprep.mubr.f32.mxu0 %v5943_v4  ;;  %5042 = vmatpush3.bf16.msra.mxu0 %v5039_v55  ;;  %v6016_v55 = vld [vmem:[%s5712_s9 + $0xd0] sm:$0x3] }
  0x47   : > { %5044 = vmatprep.subr.bf16.mxu0 %v5043_v12  ;;  %4914 = vmatpush3.bf16.msra.mxu1 %v4911_v61  ;;  %v6023_v61 = vld [vmem:[%s5712_s9 + $0xe0] sm:$0xff]  ;;  %v385_v14 = vrot.slane %v6016_v55, 1 }
  0x48   : > { %4112 = vmatmul.mubr.f32.gmra.mrb[8].mxu1 %v5939_v2  ;;  %4916 = vmatprep.subr.bf16.mxu1 %v4915_v16  ;;  %v388_v17 = vrot.slane %v6023_v61, 1  ;;  %v6178_v2 = vld [vmem:[%s5712_s9 + $0x160] sm:$0x3] }
  0x49   : > { %4432 = vmatmul.mubr.f32.gmra.mrb[8].mxu0 %v5973_v20  ;;  %4114 = vmatprep.mubr.f32.mxu1 %v5943_v4  ;;  %v6075_v45 = vsel %vm341_vm0, %v383_v52, %v385_v14  ;;  %v6090_v52 = vld [vmem:[%s5712_s9 + $0x108] sm:$0xff]  ;;  %v6093_v14 = vld [vmem:[%s5712_s9 + $0x110] sm:$0xff] }
  0x4a   : > { %4434 = vmatprep.mubr.f32.mxu0 %v5977_v25  ;;  %5046 = vmatpush3.bf16.msra.mxu0 %v5043_v12  ;;  %v6041_v12 = vsel %vm341_vm0, %v378_v27, %v380_v47  ;;  %v6057_v27 = vld [vmem:[%s5712_s9 + $0xf8] sm:$0xff]  ;;  %7230 = vst [vmem:[#allocation19_spill] sm:$0xff] %v6075_v45  ;;  %v390_v47 = vrot.slane %v6050_v19, 1 }
  0x4b   : > { %5048 = vmatprep.subr.bf16.mxu0 %v5047_v35  ;;  %4918 = vmatpush3.bf16.msra.mxu1 %v4915_v16  ;;  %7228 = vst [vmem:[#allocation17_spill] sm:$0xff] %v6041_v12  ;;  %v387_v16 = vrot.slane %v6019_v58, 1  ;;  %v393_v3 = vrot.slane %v6057_v27, 1 }
  0x4c   : > { %4115 = vmatmul.mubr.f32.gmra.mrb[10].mxu1 %v5973_v20  ;;  %4920 = vmatprep.subr.bf16.mxu1 %v4919_v43 }
  0x4d   : > { %4435 = vmatmul.mubr.f32.gmra.mrb[10].mxu0 %v6007_v46  ;;  %4117 = vmatprep.mubr.f32.mxu1 %v5977_v25  ;;  %v6079_v51 = vsel %vm341_vm0, %v387_v16, %v388_v17  ;;  %v6156_v25 = vld [vmem:[%s5712_s9 + $0x148] sm:$0x3] }
  0x4e   : > { %4437 = vmatprep.mubr.f32.mxu0 %v6011_v49  ;;  %5050 = vmatpush3.bf16.msra.mxu0 %v5047_v35  ;;  %v4927_v35 = vpack.c.bf16 %v292_v6, %v291_v5  ;;  %7231 = vst [vmem:[#allocation20_spill] sm:$0xff] %v6079_v51  ;;  %v6084_v5 = vld [vmem:[%s5712_s9 + $0x100] sm:$0x3]  ;;  %v6086_v6 = vpack.c.bf16 %v3532_v41, %v3531_v38  ;;  %v397_v41 = vrot.slane %v6090_v52, 1 }
  0x4f   : > { %5052 = vmatprep.subr.bf16.mxu0 %v5051_v59  ;;  %4922 = vmatpush3.bf16.msra.mxu1 %v4919_v43  ;;  %v3467_v43 = vld [vmem:[%s7161_s1 + $0x100] sm:$0xff]  ;;  %v395_v16 = vrot.slane %v6084_v5, 1  ;;  %v6105_v38 = vsel %vm341_vm0, %v392_v63, %v393_v3 }
  0x50   : > { %4118 = vmatmul.mubr.f32.gmra.mrb[12].mxu1 %v6007_v46  ;;  %4924 = vmatprep.subr.bf16.mxu1 %v4923_v62  ;;  %7233 = vst [vmem:[#allocation22_spill] sm:$0xff] %v6105_v38 }
  0x51   : > { %4438 = vmatmul.mubr.f32.gmra.mrb[12].mxu0 %v6041_v12  ;;  %4120 = vmatprep.mubr.f32.mxu1 %v6011_v49 }
  0x52   : > { %4440 = vmatprep.mubr.f32.mxu0 %v6045_v15  ;;  %5054 = vmatpush3.bf16.msra.mxu0 %v5051_v59  ;;  %v6095_v59 = vpack.c.bf16 %v3468_v44, %v3467_v43  ;;  %v398_v43 = vrot.slane %v6093_v14, 1  ;;  %v6110_v44 = vld [vmem:[%s5712_s9 + $0x118] sm:$0x3] }
  0x53   : > { %5056 = vmatprep.subr.bf16.mxu0 %v5055_v26  ;;  %4926 = vmatpush3.bf16.msra.mxu1 %v4923_v62  ;;  %v6101_v62 = vsel %vm341_vm0, %v388_v17, %v390_v47  ;;  %v6115_v17 = vld [vmem:[%s5712_s9 + $0x120] sm:$0xff]  ;;  %v400_v47 = vrot.slane %v6110_v44, 1 }
  0x54   : > { %4121 = vmatmul.mubr.f32.gmra.mrb[14].mxu1 %v6041_v12  ;;  %4928 = vmatprep.subr.bf16.mxu1 %v4927_v35  ;;  %7232 = vst [vmem:[#allocation21_spill] sm:$0xff] %v6101_v62  ;;  %v6129_v63 = vsel %vm341_vm0, %v397_v41, %v398_v43  ;;  %v6134_v12 = vld [vmem:[%s5712_s9 + $0x130] sm:$0x3] }
  0x55   : > { %4441 = vmatmul.mubr.f32.gmra.mrb[14].mxu0 %v6075_v45  ;;  %4123 = vmatprep.mubr.f32.mxu1 %v6045_v15  ;;  %7235 = vst [vmem:[#allocation24_spill] sm:$0xff] %v6129_v63  ;;  %v405_v41 = vrot.slane %v6134_v12, 1 }
  0x56   : > { %4443 = vmatprep.mubr.f32.mxu0 %v6079_v51  ;;  %5058 = vmatpush3.bf16.msra.mxu0 %v5055_v26  ;;  %v6118_v26 = vld [vmem:[%s5712_s9 + $0x128] sm:$0xff] }
  0x57   : > { %4930 = vmatpush3.bf16.msra.mxu1 %v4927_v35  ;;  %5060 = vmatprep.subr.bf16.mxu0 %v6086_v6  ;;  %v6125_v35 = vsel %vm341_vm0, %v393_v3, %v395_v16  ;;  %v403_v15 = vrot.slane %v6118_v26, 1  ;;  %v6141_v3 = vld [vmem:[%s5712_s9 + $0x140] sm:$0xff]  ;;  %v6147_v16 = vsel %vm341_vm0, %v398_v43, %v400_v47  ;;  %v6163_v43 = vld [vmem:[%s5712_s9 + $0x158] sm:$0xff]  ;;  %v410_v47 = vrot.slane %v6156_v25, 1 }
  0x58   : > { %4124 = vmatmul.mubr.f32.gmra.mrb[16].mxu1 %v6075_v45  ;;  %4932 = vmatprep.subr.bf16.mxu1 %v6095_v59  ;;  %7234 = vst [vmem:[#allocation23_spill] sm:$0xff] %v6125_v35  ;;  %v402_v45 = vrot.slane %v6115_v17, 1  ;;  %7236 = vst [vmem:[#allocation25_spill] sm:$0xff] %v6147_v16  ;;  %v408_v46 = vrot.slane %v6141_v3, 1  ;;  %v413_v4 = vrot.slane %v6163_v43, 1 }
  0x59   : > { %4444 = vmatmul.mubr.f32.gmra.mrb[16].mxu0 %v6101_v62  ;;  %4126 = vmatprep.mubr.f32.mxu1 %v6079_v51  ;;  %v6138_v51 = vld [vmem:[%s5712_s9 + $0x138] sm:$0xff] }
  0x5a   : > { %4446 = vmatprep.mubr.f32.mxu0 %v6105_v38  ;;  %v6151_v49 = vsel %vm341_vm0, %v402_v45, %v403_v15  ;;  %v6169_v45 = vsel %vm341_vm0, %v403_v15, %v405_v41  ;;  %v6185_v15 = vld [vmem:[%s5712_s9 + $0x170] sm:$0xff]  ;;  %v415_v41 = vrot.slane %v6178_v2, 1 }
  0x5b   : > { %7237 = vst [vmem:[#allocation26_spill] sm:$0xff] %v6151_v49  ;;  %7238 = vst [vmem:[#allocation27_spill] sm:$0xff] %v6169_v45  ;;  %v418_v48 = vrot.slane %v6185_v15, 1 }
  0x5c   : > { %4127 = vmatmul.mubr.f32.gmra.mrb[18].mxu1 %v6101_v62  ;;  %v407_v62 = vrot.slane %v6138_v51, 1 }
  0x5d   : > { %4447 = vmatmul.mubr.f32.gmra.mrb[18].mxu0 %v6125_v35  ;;  %4129 = vmatprep.mubr.f32.mxu1 %v6105_v38  ;;  %v6160_v38 = vld [vmem:[%s5712_s9 + $0x150] sm:$0xff] }
  0x5e   : > { %4449 = vmatprep.mubr.f32.mxu0 %v6129_v63  ;;  %v6173_v20 = vsel %vm341_vm0, %v407_v62, %v408_v46  ;;  %v6191_v62 = vsel %vm341_vm0, %v408_v46, %v410_v47  ;;  %v6213_v46 = vsel %vm341_vm0, %v413_v4, %v415_v41 }
  0x5f   : > { %7239 = vst [vmem:[#allocation28_spill] sm:$0xff] %v6173_v20  ;;  %7240 = vst [vmem:[#allocation29_spill] sm:$0xff] %v6191_v62 }
  0x60   : > { %4130 = vmatmul.mubr.f32.gmra.mrb[20].mxu1 %v6125_v35  ;;  %v412_v35 = vrot.slane %v6160_v38, 1  ;;  %7244 = vst [vmem:[#allocation33_spill] sm:$0xff] %v6213_v46 }
  0x61   : > { %4450 = vmatmul.mubr.f32.gmra.mrb[20].mxu0 %v6147_v16  ;;  %4132 = vmatprep.mubr.f32.mxu1 %v6129_v63  ;;  %v6182_v63 = vld [vmem:[%s5712_s9 + $0x168] sm:$0xff] }
  0x62   : > { %4452 = vmatprep.mubr.f32.mxu0 %v6151_v49  ;;  %v6195_v50 = vsel %vm341_vm0, %v412_v35, %v413_v4  ;;  %v420_v35 = vrot.slane %v6200_v36, 1 }
  0x63   : > { %7241 = vst [vmem:[#allocation30_spill] sm:$0xff] %v6195_v50 }
  0x64   : > { %4133 = vmatmul.mubr.f32.gmra.mrb[22].mxu1 %v6147_v16  ;;  %v417_v16 = vrot.slane %v6182_v63, 1  ;;  %v6229_v4 = vsel %vm341_vm0, %v418_v48, %v420_v35  ;;  %v932_v35 = vrot.slane %v5806_v0, 2 }
  0x65   : > { %4453 = vmatmul.mubr.f32.gmra.mrb[22].mxu0 %v6169_v45  ;;  %4135 = vmatprep.mubr.f32.mxu1 %v6151_v49  ;;  %v6204_v49 = vld [vmem:[%s5712_s9 + $0x180] sm:$0xff]  ;;  %7247 = vst [vmem:[#allocation36_spill] sm:$0xff] %v6229_v4 }
  0x66   : > { %4455 = vmatprep.mubr.f32.mxu0 %v6173_v20  ;;  %7242 = vst [vmem:[#allocation31_spill] sm:$0xff] %v6204_v49  ;;  %v6217_v47 = vsel %vm341_vm0, %v417_v16, %v418_v48  ;;  %v1588_v16 = vrot.slane %v6222_v57, 1  ;;  %v3535_v57 = vld [vmem:[%s7161_s1 + $0x320] sm:$0xff] }
  0x67   : > { %7245 = vst [vmem:[#allocation34_spill] sm:$0xff] %v6217_v47 }
  0x68   : > { %4136 = vmatmul.mubr.f32.gmra.mrb[24].mxu1 %v6169_v45  ;;  %v1585_v45 = vrot.slane %v6204_v49, 1  ;;  %v6243_v48 = vsel %vm341_vm0, %v1586_v18, %v1588_v16 }
  0x69   : > { %4456 = vmatmul.mubr.f32.gmra.mrb[24].mxu0 %v6191_v62  ;;  %4138 = vmatprep.mubr.f32.mxu1 %v6173_v20  ;;  %v927_v20 = vrot.slane %v5734_v31, 2  ;;  %7249 = vst [vmem:[#allocation38_spill] sm:$0xff] %v6243_v48 }
  0x6a   : > { %4458 = vmatprep.mubr.f32.mxu0 %v6195_v50  ;;  %v6233_v41 = vsel %vm341_vm0, %v1585_v45, %v1586_v18  ;;  %v3469_v18 = vld [vmem:[%s7161_s1 + $0x110] sm:$0xff] }
  0x6b   : > { %7248 = vst [vmem:[#allocation37_spill] sm:$0xff] %v6233_v41  ;;  %v6246_v45 = vsel %vm921_vm1, %v927_v20, %v928_v34  ;;  %v3470_v20 = vld [vmem:[%s7161_s1 + $0x118] sm:$0xff] }
  0x6c   : > { %4139 = vmatmul.mubr.f32.gmra.mrb[26].mxu1 %v6191_v62  ;;  %v933_v62 = vrot.slane %v5809_v1, 2 }
  0x6d   : > { %4459 = vmatmul.mubr.f32.gmra.mrb[26].mxu0 %v6213_v46  ;;  %4141 = vmatprep.mubr.f32.mxu1 %v6195_v50  ;;  %v930_v50 = vrot.slane %v5794_v60, 2  ;;  %v3534_v60 = vld [vmem:[%s7161_s1 + $0x318] sm:$0xff] }
  0x6e   : > { %4461 = vmatprep.mubr.f32.mxu0 %v6217_v47 }
  0x6f   : > { %v6267_v16 = vsel %vm921_vm1, %v928_v34, %v930_v50  ;;  %v3536_v34 = vld [vmem:[%s7161_s1 + $0x328] sm:$0xff]  ;;  %v4935_v50 = vpack.c.bf16 %v3470_v20, %v3469_v18  ;;  %v943_v18 = vrot.slane %v5855_v24, 2 }
  0x70   : > { %4142 = vmatmul.mubr.f32.gmra.mrb[28].mxu1 %v6213_v46  ;;  %v5067_v20 = vpack.c.bf16 %v3536_v34, %v3535_v57  ;;  %v3473_v57 = vld [vmem:[%s7161_s1 + $0x130] sm:$0xff]  ;;  %v947_v34 = vrot.slane %v5884_v40, 2 }
  0x71   : > { %4462 = vmatmul.mubr.f32.gmra.mrb[28].mxu0 %v6229_v4  ;;  %4144 = vmatprep.mubr.f32.mxu1 %v6217_v47  ;;  %v3533_v47 = vld [vmem:[%s7161_s1 + $0x310] sm:$0xff] }
  0x72   : > { %4464 = vmatprep.mubr.f32.mxu0 %v6233_v41  ;;  %v935_v41 = vrot.slane %v5816_v8, 2  ;;  %v5063_v46 = vpack.c.bf16 %v3534_v60, %v3533_v47  ;;  %v3471_v8 = vld [vmem:[%s7161_s1 + $0x120] sm:$0xff] }
  0x74   : > { %4145 = vmatmul.mubr.f32.gmra.mrb[30].mxu1 %v6229_v4  ;;  %v6271_v4 = vsel %vm921_vm1, %v932_v35, %v933_v62  ;;  %v6293_v47 = vsel %vm921_vm1, %v933_v62, %v935_v41  ;;  %v940_v35 = vrot.slane %v5849_v21, 2  ;;  %v3538_v21 = vld [vmem:[%s7161_s1 + $0x338] sm:$0xff]  ;;  %v945_v41 = vrot.slane %v5881_v39, 2  ;;  %v3540_v39 = vld [vmem:[%s7161_s1 + $0x348] sm:$0xff] }
  0x75   : > { %4465 = vmatmul.mubr.f32.gmra.mrb[30].mxu0 %v6243_v48  ;;  %4179 = vmatprep.mubr.f32.mxu1 %v5727_v28  ;;  %v937_v28 = vrot.slane %v5819_v9, 2  ;;  %v938_v48 = vrot.slane %v5822_v10, 2 }
  0x76   : > { %4499 = vmatprep.mubr.f32.mxu0 %v6246_v45 }
  0x77   : > { %v6297_v60 = vsel %vm921_vm1, %v937_v28, %v938_v48 }
  0x78   : > { %4180 = vmatmul.mubr.f32.vlgmr.msra.gmra.mrb[0].mxu1 %v5730_v29  ;;  %v3472_v29 = vld [vmem:[%s7161_s1 + $0x128] sm:$0xff] }
  0x79   : > { %4500 = vmatmul.mubr.f32.vlgmr.msra.gmra.mrb[0].mxu0 %v6267_v16  ;;  %4182 = vmatprep.mubr.f32.mxu1 %v5734_v31  ;;  %v942_v31 = vrot.slane %v5852_v23, 2  ;;  %v4939_v62 = vpack.c.bf16 %v3472_v29, %v3471_v8  ;;  %v948_v8 = vrot.slane %v5887_v42, 2 }
  0x7a   : > { %5062 = vmatpush3.bf16.msra.mxu0 %v6086_v6  ;;  %4502 = vmatprep.mubr.f32.mxu0 %v6271_v4  ;;  %v3537_v6 = vld [vmem:[%s7161_s1 + $0x330] sm:$0xff] }
  0x7b   : > { %5064 = vmatprep.subr.bf16.mxu0 %v5063_v46  ;;  %4934 = vmatpush3.bf16.msra.mxu1 %v6095_v59  ;;  %v6319_v59 = vsel %vm921_vm1, %v938_v48, %v940_v35  ;;  %v6323_v28 = vsel %vm921_vm1, %v942_v31, %v943_v18  ;;  %v5071_v29 = vpack.c.bf16 %v3538_v21, %v3537_v6  ;;  %v3539_v48 = vld [vmem:[%s7161_s1 + $0x340] sm:$0xff]  ;;  %v950_v31 = vrot.slane %v5914_v53, 2  ;;  %v3542_v53 = vld [vmem:[%s7161_s1 + $0x358] sm:$0xff] }
  0x7c   : > { %4183 = vmatmul.mubr.f32.gmra.mrb[2].mxu1 %v5737_v32  ;;  %4936 = vmatprep.subr.bf16.mxu1 %v4935_v50  ;;  %v3474_v32 = vld [vmem:[%s7161_s1 + $0x138] sm:$0xff]  ;;  %v6344_v35 = vsel %vm921_vm1, %v943_v18, %v945_v41  ;;  %v6348_v6 = vsel %vm921_vm1, %v947_v34, %v948_v8  ;;  %v952_v21 = vrot.slane %v5917_v54, 2  ;;  %v3541_v18 = vld [vmem:[%s7161_s1 + $0x350] sm:$0xff]  ;;  %v955_v34 = vrot.slane %v5948_v7, 2  ;;  %v3544_v7 = vld [vmem:[%s7161_s1 + $0x368] sm:$0xff] }
  0x7d   : > { %4503 = vmatmul.mubr.f32.gmra.mrb[2].mxu0 %v6293_v47  ;;  %4185 = vmatprep.mubr.f32.mxu1 %v5806_v0  ;;  %v6369_v41 = vsel %vm921_vm1, %v948_v8, %v950_v31  ;;  %v3543_v8 = vld [vmem:[%s7161_s1 + $0x360] sm:$0xff] }
  0x7e   : > { %4505 = vmatprep.mubr.f32.mxu0 %v6297_v60  ;;  %5066 = vmatpush3.bf16.msra.mxu0 %v5063_v46  ;;  %v4943_v46 = vpack.c.bf16 %v3474_v32, %v3473_v57  ;;  %v953_v57 = vrot.slane %v5921_v56, 2  ;;  %v5075_v32 = vpack.c.bf16 %v3540_v39, %v3539_v48  ;;  %v957_v39 = vrot.slane %v5951_v11, 2 }
  0x7f   : > { %5068 = vmatprep.subr.bf16.mxu0 %v5067_v20  ;;  %4938 = vmatpush3.bf16.msra.mxu1 %v4935_v50  ;;  %v3475_v50 = vld [vmem:[%s7161_s1 + $0x140] sm:$0xff] }
  0x80   : > { %4186 = vmatmul.mubr.f32.gmra.mrb[4].mxu1 %v5809_v1  ;;  %4940 = vmatprep.subr.bf16.mxu1 %v4939_v62  ;;  %v3476_v1 = vld [vmem:[%s7161_s1 + $0x148] sm:$0xff]  ;;  %v6373_v48 = vsel %vm921_vm1, %v952_v21, %v953_v57  ;;  %v6394_v31 = vsel %vm921_vm1, %v953_v57, %v955_v34  ;;  %v960_v21 = vrot.slane %v5982_v30, 2  ;;  %v3545_v57 = vld [vmem:[%s7161_s1 + $0x370] sm:$0xff]  ;;  %v3546_v30 = vld [vmem:[%s7161_s1 + $0x378] sm:$0xff] }
  0x81   : > { %4506 = vmatmul.mubr.f32.gmra.mrb[4].mxu0 %v6319_v59  ;;  %4188 = vmatprep.mubr.f32.mxu1 %v5819_v9  ;;  %7250 = vst [vmem:[#allocation39_spill] sm:$0xff] %v6373_v48 }
  0x82   : > { %4508 = vmatprep.mubr.f32.mxu0 %v6323_v28  ;;  %5070 = vmatpush3.bf16.msra.mxu0 %v5067_v20  ;;  %v4947_v20 = vpack.c.bf16 %v3476_v1, %v3475_v50  ;;  %v958_v50 = vrot.slane %v5955_v13, 2  ;;  %v5079_v1 = vpack.c.bf16 %v3542_v53, %v3541_v18  ;;  %v962_v53 = vrot.slane %v5985_v33, 2 }
  0x83   : > { %5072 = vmatprep.subr.bf16.mxu0 %v5071_v29  ;;  %4942 = vmatpush3.bf16.msra.mxu1 %v4939_v62  ;;  %v3477_v62 = vld [vmem:[%s7161_s1 + $0x150] sm:$0xff] }
  0x84   : > { %4189 = vmatmul.mubr.f32.gmra.mrb[6].mxu1 %v5822_v10  ;;  %4944 = vmatprep.subr.bf16.mxu1 %v4943_v46  ;;  %v3478_v10 = vld [vmem:[%s7161_s1 + $0x158] sm:$0xff]  ;;  %v6398_v18 = vsel %vm921_vm1, %v957_v39, %v958_v50  ;;  %v6419_v34 = vsel %vm921_vm1, %v958_v50, %v960_v21  ;;  %v965_v39 = vrot.slane %v6016_v55, 2  ;;  %v3547_v50 = vld [vmem:[%s7161_s1 + $0x380] sm:$0xff]  ;;  %v3548_v55 = vld [vmem:[%s7161_s1 + $0x388] sm:$0xff] }
  0x85   : > { %4509 = vmatmul.mubr.f32.gmra.mrb[6].mxu0 %v6344_v35  ;;  %4191 = vmatprep.mubr.f32.mxu1 %v5852_v23  ;;  %7251 = vst [vmem:[#allocation40_spill] sm:$0xff] %v6398_v18 }
  0x86   : > { %4511 = vmatprep.mubr.f32.mxu0 %v6348_v6  ;;  %5074 = vmatpush3.bf16.msra.mxu0 %v5071_v29  ;;  %v4951_v29 = vpack.c.bf16 %v3478_v10, %v3477_v62  ;;  %v963_v62 = vrot.slane %v5989_v37, 2  ;;  %v5083_v10 = vpack.c.bf16 %v3544_v7, %v3543_v8  ;;  %v967_v7 = vrot.slane %v6019_v58, 2 }
  0x87   : > { %5076 = vmatprep.subr.bf16.mxu0 %v5075_v32  ;;  %4946 = vmatpush3.bf16.msra.mxu1 %v4943_v46  ;;  %v3479_v46 = vld [vmem:[%s7161_s1 + $0x160] sm:$0xff] }
  0x88   : > { %4192 = vmatmul.mubr.f32.gmra.mrb[8].mxu1 %v5855_v24  ;;  %4948 = vmatprep.subr.bf16.mxu1 %v4947_v20  ;;  %v3480_v24 = vld [vmem:[%s7161_s1 + $0x168] sm:$0xff]  ;;  %v6423_v8 = vsel %vm921_vm1, %v962_v53, %v963_v62  ;;  %v6444_v21 = vsel %vm921_vm1, %v963_v62, %v965_v39  ;;  %v970_v53 = vrot.slane %v6050_v19, 2  ;;  %v975_v62 = vrot.slane %v6084_v5, 2 }
  0x89   : > { %4512 = vmatmul.mubr.f32.gmra.mrb[8].mxu0 %v6369_v41  ;;  %4194 = vmatprep.mubr.f32.mxu1 %v5884_v40  ;;  %7252 = vst [vmem:[#allocation41_spill] sm:$0xff] %v6423_v8  ;;  %v978_v39 = vrot.slane %v6093_v14, 2 }
  0x8a   : > { %4514 = vmatprep.mubr.f32.mxu0 %v6373_v48  ;;  %5078 = vmatpush3.bf16.msra.mxu0 %v5075_v32  ;;  %v4955_v48 = vpack.c.bf16 %v3480_v24, %v3479_v46  ;;  %v3481_v32 = vld [vmem:[%s7161_s1 + $0x170] sm:$0xff]  ;;  %v968_v46 = vrot.slane %v6023_v61, 2  ;;  %v5087_v24 = vpack.c.bf16 %v3546_v30, %v3545_v57  ;;  %v972_v30 = vrot.slane %v6053_v22, 2 }
  0x8b   : > { %5080 = vmatprep.subr.bf16.mxu0 %v5079_v1  ;;  %4950 = vmatpush3.bf16.msra.mxu1 %v4947_v20  ;;  %v3482_v20 = vld [vmem:[%s7161_s1 + $0x178] sm:$0xff] }
  0x8c   : > { %4195 = vmatmul.mubr.f32.gmra.mrb[10].mxu1 %v5887_v42  ;;  %4952 = vmatprep.subr.bf16.mxu1 %v4951_v29  ;;  %v6448_v57 = vsel %vm921_vm1, %v967_v7, %v968_v46  ;;  %v6461_v19 = vsel %vm921_vm1, %v968_v46, %v970_v53  ;;  %v980_v7 = vrot.slane %v6110_v44, 2  ;;  %v985_v44 = vrot.slane %v6134_v12, 2 }
  0x8d   : > { %4515 = vmatmul.mubr.f32.gmra.mrb[10].mxu0 %v6394_v31  ;;  %4197 = vmatprep.mubr.f32.mxu1 %v5917_v54  ;;  %v990_v12 = vrot.slane %v6156_v25, 2  ;;  %v995_v25 = vrot.slane %v6178_v2, 2  ;;  %v1000_v2 = vrot.slane %v6200_v36, 2 }
  0x8e   : > { %4517 = vmatprep.mubr.f32.mxu0 %v6398_v18  ;;  %5082 = vmatpush3.bf16.msra.mxu0 %v5079_v1  ;;  %v4959_v18 = vpack.c.bf16 %v3482_v20, %v3481_v32  ;;  %v3483_v1 = vld [vmem:[%s7161_s1 + $0x180] sm:$0xff]  ;;  %v973_v32 = vrot.slane %v6057_v27, 2  ;;  %v6452_v20 = vpack.c.bf16 %v3548_v55, %v3547_v50  ;;  %v6489_v50 = vsel %vm921_vm1, %v978_v39, %v980_v7 }
  0x8f   : > { %5084 = vmatprep.subr.bf16.mxu0 %v5083_v10  ;;  %4954 = vmatpush3.bf16.msra.mxu1 %v4951_v29  ;;  %v3484_v29 = vld [vmem:[%s7161_s1 + $0x188] sm:$0xff]  ;;  %v997_v7 = vrot.slane %v6182_v63, 2 }
  0x90   : > { %4198 = vmatmul.mubr.f32.gmra.mrb[12].mxu1 %v5921_v56  ;;  %4956 = vmatprep.subr.bf16.mxu1 %v4955_v48  ;;  %v6476_v5 = vsel %vm921_vm1, %v973_v32, %v975_v62  ;;  %v993_v62 = vrot.slane %v6163_v43, 2 }
  0x91   : > { %4518 = vmatmul.mubr.f32.gmra.mrb[12].mxu0 %v6419_v34  ;;  %4200 = vmatprep.mubr.f32.mxu1 %v5951_v11 }
  0x92   : > { %4520 = vmatprep.mubr.f32.mxu0 %v6423_v8  ;;  %5086 = vmatpush3.bf16.msra.mxu0 %v5083_v10  ;;  %v6455_v8 = vpack.c.bf16 %v3484_v29, %v3483_v1  ;;  %v977_v10 = vrot.slane %v6090_v52, 2  ;;  %v987_v1 = vrot.slane %v6138_v51, 2  ;;  %v988_v29 = vrot.slane %v6141_v3, 2 }
  0x93   : > { %5088 = vmatprep.subr.bf16.mxu0 %v5087_v24  ;;  %4958 = vmatpush3.bf16.msra.mxu1 %v4955_v48  ;;  %v6465_v48 = vsel %vm921_vm1, %v972_v30, %v973_v32  ;;  %v992_v32 = vrot.slane %v6160_v38, 2 }
  0x94   : > { %4201 = vmatmul.mubr.f32.gmra.mrb[14].mxu1 %v5955_v13  ;;  %4960 = vmatprep.subr.bf16.mxu1 %v4959_v18  ;;  %v6480_v46 = vsel %vm921_vm1, %v977_v10, %v978_v39  ;;  %v6506_v30 = vsel %vm921_vm1, %v987_v1, %v988_v29  ;;  %v6515_v10 = vsel %vm921_vm1, %v988_v29, %v990_v12  ;;  %v1866_v1 = vrot.slane %v6204_v49, 2  ;;  %v7256_v29 = vld [vmem:[#allocation32_spill] sm:$0xff] }
  0x95   : > { %4521 = vmatmul.mubr.f32.gmra.mrb[14].mxu0 %v6444_v21  ;;  %4203 = vmatprep.mubr.f32.mxu1 %v5985_v33  ;;  %7253 = vst [vmem:[#allocation42_spill] sm:$0xff] %v6515_v10  ;;  %v6519_v39 = vsel %vm921_vm1, %v992_v32, %v993_v62  ;;  %v1867_v12 = vrot.slane %v7256_v29, 2  ;;  %v7258_v29 = vld [vmem:[#allocation5_spill] sm:$0xff] }
  0x96   : > { %4523 = vmatprep.mubr.f32.mxu0 %v6448_v57  ;;  %5090 = vmatpush3.bf16.msra.mxu0 %v5087_v24  ;;  %v983_v24 = vrot.slane %v6118_v26, 2  ;;  %7254 = vst [vmem:[#allocation43_spill] sm:$0xff] %v6519_v39 }
  0x97   : > { %4962 = vmatpush3.bf16.msra.mxu1 %v4959_v18  ;;  %5092 = vmatprep.subr.bf16.mxu0 %v6452_v20  ;;  %v982_v18 = vrot.slane %v6115_v17, 2  ;;  %v6547_v49 = vsel %vm921_vm1, %v1866_v1, %v1867_v12  ;;  %v3550_v1 = vld [vmem:[%s7161_s1 + $0x398] sm:$0xff] }
  0x98   : > { %4204 = vmatmul.mubr.f32.gmra.mrb[16].mxu1 %v5989_v37  ;;  %4964 = vmatprep.subr.bf16.mxu1 %v6455_v8  ;;  %v6502_v53 = vsel %vm921_vm1, %v983_v24, %v985_v44 }
  0x99   : > { %4524 = vmatmul.mubr.f32.gmra.mrb[16].mxu0 %v6461_v19  ;;  %4206 = vmatprep.mubr.f32.mxu1 %v6019_v58  ;;  %v6493_v55 = vsel %vm921_vm1, %v982_v18, %v983_v24  ;;  %v998_v18 = vrot.slane %v6185_v15, 2  ;;  %v6528_v24 = vsel %vm921_vm1, %v993_v62, %v995_v25  ;;  %v7257_v62 = vld [vmem:[#allocation35_spill] sm:$0xff]  ;;  %v5485_v25 = vld [vmem:[%s5712_s9] sm:$0xff] }
  0x9a   : > { %4526 = vmatprep.mubr.f32.mxu0 %v6465_v48  ;;  %7255 = vst [vmem:[#allocation44_spill] sm:$0xff] %v6528_v24  ;;  %v1869_v36 = vrot.slane %v7257_v62, 2  ;;  %v3486_v62 = vld [vmem:[%s7161_s1 + $0x198] sm:$0xff] }
  0x9b   : > { %v6532_v44 = vsel %vm921_vm1, %v997_v7, %v998_v18  ;;  %v6541_v32 = vsel %vm921_vm1, %v998_v18, %v1000_v2  ;;  %v922_v7 = vrot.slane %v5485_v25, 2  ;;  %v3551_v25 = vld [vmem:[%s7161_s1 + $0x3a0] sm:$0xff] }
  0x9c   : > { %4207 = vmatmul.mubr.f32.gmra.mrb[18].mxu1 %v6023_v61  ;;  %v6555_v18 = vsel %vm921_vm1, %v1867_v12, %v1869_v36  ;;  %v3485_v12 = vld [vmem:[%s7161_s1 + $0x190] sm:$0xff] }
  0x9d   : > { %4527 = vmatmul.mubr.f32.gmra.mrb[18].mxu0 %v6476_v5  ;;  %4209 = vmatprep.mubr.f32.mxu1 %v6053_v22 }
  0x9e   : > { %4529 = vmatprep.mubr.f32.mxu0 %v6480_v46 }
  0xa0   : > { %4210 = vmatmul.mubr.f32.gmra.mrb[20].mxu1 %v6057_v27 }
  0xa1   : > { %4530 = vmatmul.mubr.f32.gmra.mrb[20].mxu0 %v6489_v50  ;;  %4212 = vmatprep.mubr.f32.mxu1 %v6090_v52 }
  0xa2   : > { %4532 = vmatprep.mubr.f32.mxu0 %v6493_v55 }
  0xa4   : > { %4213 = vmatmul.mubr.f32.gmra.mrb[22].mxu1 %v6093_v14 }
  0xa5   : > { %4533 = vmatmul.mubr.f32.gmra.mrb[22].mxu0 %v6502_v53  ;;  %4215 = vmatprep.mubr.f32.mxu1 %v6115_v17 }
  0xa6   : > { %4535 = vmatprep.mubr.f32.mxu0 %v6506_v30 }
  0xa8   : > { %4216 = vmatmul.mubr.f32.gmra.mrb[24].mxu1 %v6118_v26 }
  0xa9   : > { %4536 = vmatmul.mubr.f32.gmra.mrb[24].mxu0 %v6515_v10  ;;  %4218 = vmatprep.mubr.f32.mxu1 %v6138_v51 }
  0xaa   : > { %4538 = vmatprep.mubr.f32.mxu0 %v6519_v39  ;;  %v5486_v39 = vld [vmem:[%s5712_s9 + $0x8] sm:$0xff] }
  0xab   : > { %v923_v10 = vrot.slane %v5486_v39, 2  ;;  %v3549_v39 = vld [vmem:[%s7161_s1 + $0x390] sm:$0xff] }
  0xac   : > { %4219 = vmatmul.mubr.f32.gmra.mrb[26].mxu1 %v6141_v3  ;;  %v5095_v36 = vpack.c.bf16 %v3550_v1, %v3549_v39  ;;  %v3554_v1 = vld [vmem:[%s7161_s1 + $0x3b8] sm:$0xff] }
  0xad   : > { %4539 = vmatmul.mubr.f32.gmra.mrb[26].mxu0 %v6528_v24  ;;  %4221 = vmatprep.mubr.f32.mxu1 %v6160_v38  ;;  %v925_v24 = vrot.slane %v7258_v29, 2  ;;  %v924_v2 = vsel %vm921_vm1, %v922_v7, %v923_v10  ;;  %v6581_v7 = vld [vmem:[%s5712_s9 + $0x38] sm:$0xff] }
  0xae   : > { %4541 = vmatprep.mubr.f32.mxu0 %v6532_v44 }
  0xaf   : > { %v926_v29 = vsel %vm921_vm1, %v923_v10, %v925_v24  ;;  %v3552_v10 = vld [vmem:[%s7161_s1 + $0x3a8] sm:$0xff]  ;;  %v4967_v24 = vpack.c.bf16 %v3486_v62, %v3485_v12  ;;  %v3555_v12 = vld [vmem:[%s7161_s1 + $0x3c0] sm:$0xff] }
  0xb0   : > { %4222 = vmatmul.mubr.f32.gmra.mrb[28].mxu1 %v6163_v43  ;;  %v5099_v39 = vpack.c.bf16 %v3552_v10, %v3551_v25  ;;  %v3556_v62 = vld [vmem:[%s7161_s1 + $0x3c8] sm:$0xff] }
  0xb1   : > { %4542 = vmatmul.mubr.f32.gmra.mrb[28].mxu0 %v6541_v32  ;;  %4224 = vmatprep.mubr.f32.mxu1 %v6182_v63  ;;  %v6621_v10 = vld [vmem:[%s5712_s9 + $0x68] sm:$0xff] }
  0xb2   : > { %4544 = vmatprep.mubr.f32.mxu0 %v6547_v49 }
  0xb4   : > { %4225 = vmatmul.mubr.f32.gmra.mrb[30].mxu1 %v6185_v15 }
  0xb5   : > { %4545 = vmatmul.mubr.f32.gmra.mrb[30].mxu0 %v6555_v18  ;;  %4259 = vmatprep.mubr.f32.mxu1 %v924_v2  ;;  %v3488_v2 = vld [vmem:[%s7161_s1 + $0x1a8] sm:$0xff] }
  0xb6   : > { %4579 = vmatprep.mubr.f32.mxu0 %v5806_v0  ;;  %v3487_v0 = vld [vmem:[%s7161_s1 + $0x1a0] sm:$0xff] }
  0xb8   : > { %4260 = vmatmul.mubr.f32.vlgmr.msra.gmra.mrb[0].mxu1 %v926_v29  ;;  %v4971_v29 = vpack.c.bf16 %v3488_v2, %v3487_v0  ;;  %v3557_v0 = vld [vmem:[%s7161_s1 + $0x3d0] sm:$0xff]  ;;  %v3558_v2 = vld [vmem:[%s7161_s1 + $0x3d8] sm:$0xff] }
  0xb9   : > { %4580 = vmatmul.mubr.f32.vlgmr.msra.gmra.mrb[0].mxu0 %v6581_v7  ;;  %4262 = vmatprep.mubr.f32.mxu1 %v6246_v45  ;;  %v3553_v45 = vld [vmem:[%s7161_s1 + $0x3b0] sm:$0xff] }
  0xba   : > { %5094 = vmatpush3.bf16.msra.mxu0 %v6452_v20  ;;  %4582 = vmatprep.mubr.f32.mxu0 %v5819_v9  ;;  %v6602_v20 = vld [vmem:[%s5712_s9 + $0x50] sm:$0xff] }
  0xbb   : > { %5096 = vmatprep.subr.bf16.mxu0 %v5095_v36  ;;  %4966 = vmatpush3.bf16.msra.mxu1 %v6455_v8  ;;  %v3489_v9 = vld [vmem:[%s7161_s1 + $0x1b0] sm:$0xff]  ;;  %v5103_v8 = vpack.c.bf16 %v3554_v1, %v3553_v45  ;;  %v5111_v1 = vpack.c.bf16 %v3558_v2, %v3557_v0  ;;  %v3564_v0 = vld [vmem:[%s7161_s1 + $0x408] sm:$0xff]  ;;  %v7260_v2 = vld [vmem:[#allocation40_spill] sm:$0xff] }
  0xbc   : > { %4263 = vmatmul.mubr.f32.gmra.mrb[2].mxu1 %v6267_v16  ;;  %4968 = vmatprep.subr.bf16.mxu1 %v4967_v24  ;;  %v3490_v16 = vld [vmem:[%s7161_s1 + $0x1b8] sm:$0xff] }
  0xbd   : > { %4583 = vmatmul.mubr.f32.gmra.mrb[2].mxu0 %v6602_v20  ;;  %4265 = vmatprep.mubr.f32.mxu1 %v6271_v4  ;;  %v4975_v25 = vpack.c.bf16 %v3490_v16, %v3489_v9  ;;  %v3496_v16 = vld [vmem:[%s7161_s1 + $0x1e8] sm:$0xff] }
  0xbe   : > { %4585 = vmatprep.mubr.f32.mxu0 %v5852_v23  ;;  %5098 = vmatpush3.bf16.msra.mxu0 %v5095_v36  ;;  %v3491_v23 = vld [vmem:[%s7161_s1 + $0x1c0] sm:$0xff]  ;;  %v3492_v36 = vld [vmem:[%s7161_s1 + $0x1c8] sm:$0xff] }
  0xbf   : > { %5100 = vmatprep.subr.bf16.mxu0 %v5099_v39  ;;  %4970 = vmatpush3.bf16.msra.mxu1 %v4967_v24  ;;  %v5107_v24 = vpack.c.bf16 %v3556_v62, %v3555_v12  ;;  %v4979_v45 = vpack.c.bf16 %v3492_v36, %v3491_v23  ;;  %v3561_v12 = vld [vmem:[%s7161_s1 + $0x3f0] sm:$0xff]  ;;  %v3562_v62 = vld [vmem:[%s7161_s1 + $0x3f8] sm:$0xff] }
  0xc0   : > { %4266 = vmatmul.mubr.f32.gmra.mrb[4].mxu1 %v6293_v47  ;;  %4972 = vmatprep.subr.bf16.mxu1 %v4971_v29  ;;  %v3498_v23 = vld [vmem:[%s7161_s1 + $0x1f8] sm:$0xff]  ;;  %v5119_v36 = vpack.c.bf16 %v3562_v62, %v3561_v12  ;;  %v5493_v12 = vld [vmem:[%s5712_s9 + $0x48] sm:$0xff] }
  0xc1   : > { %4586 = vmatmul.mubr.f32.gmra.mrb[4].mxu0 %v6621_v10  ;;  %4268 = vmatprep.mubr.f32.mxu1 %v6297_v60  ;;  %v7271_v62 = vld [vmem:[#allocation10_spill] sm:$0xff] }
  0xc2   : > { %4588 = vmatprep.mubr.f32.mxu0 %v5884_v40  ;;  %5102 = vmatpush3.bf16.msra.mxu0 %v5099_v39  ;;  %v3493_v40 = vld [vmem:[%s7161_s1 + $0x1d0] sm:$0xff]  ;;  %v3494_v39 = vld [vmem:[%s7161_s1 + $0x1d8] sm:$0xff] }
  0xc3   : > { %5104 = vmatprep.subr.bf16.mxu0 %v5103_v8  ;;  %4974 = vmatpush3.bf16.msra.mxu1 %v4971_v29  ;;  %v3560_v29 = vld [vmem:[%s7161_s1 + $0x3e8] sm:$0xff]  ;;  %v4983_v9 = vpack.c.bf16 %v3494_v39, %v3493_v40  ;;  %v5491_v40 = vld [vmem:[%s5712_s9 + $0x20] sm:$0xff] }
  0xc4   : > { %4269 = vmatmul.mubr.f32.gmra.mrb[6].mxu1 %v6319_v59  ;;  %4976 = vmatprep.subr.bf16.mxu1 %v4975_v25  ;;  %v3567_v39 = vld [vmem:[%s7161_s1 + $0x420] sm:$0xff] }
  0xc5   : > { %4589 = vmatmul.mubr.f32.gmra.mrb[6].mxu0 %v5887_v42  ;;  %4271 = vmatprep.mubr.f32.mxu1 %v6323_v28  ;;  %v3559_v42 = vld [vmem:[%s7161_s1 + $0x3e0] sm:$0xff] }
  0xc6   : > { %4591 = vmatprep.mubr.f32.mxu0 %v5917_v54  ;;  %5106 = vmatpush3.bf16.msra.mxu0 %v5103_v8  ;;  %v3495_v54 = vld [vmem:[%s7161_s1 + $0x1e0] sm:$0xff]  ;;  %v5115_v8 = vpack.c.bf16 %v3560_v29, %v3559_v42  ;;  %v7268_v42 = vld [vmem:[#allocation7_spill] sm:$0xff] }
  0xc7   : > { %5108 = vmatprep.subr.bf16.mxu0 %v5107_v24  ;;  %4978 = vmatpush3.bf16.msra.mxu1 %v4975_v25  ;;  %v7259_v25 = vld [vmem:[#allocation39_spill] sm:$0xff] }
  0xc8   : > { %4272 = vmatmul.mubr.f32.gmra.mrb[8].mxu1 %v6344_v35  ;;  %4980 = vmatprep.subr.bf16.mxu1 %v4979_v45  ;;  %v5492_v29 = vld [vmem:[%s5712_s9 + $0x30] sm:$0xff] }
  0xc9   : > { %4592 = vmatmul.mubr.f32.gmra.mrb[8].mxu0 %v5921_v56  ;;  %4274 = vmatprep.mubr.f32.mxu1 %v6348_v6  ;;  %v4987_v56 = vpack.c.bf16 %v3496_v16, %v3495_v54  ;;  %v3569_v16 = vld [vmem:[%s7161_s1 + $0x430] sm:$0xff] }
  0xca   : > { %4594 = vmatprep.mubr.f32.mxu0 %v5951_v11  ;;  %5110 = vmatpush3.bf16.msra.mxu0 %v5107_v24  ;;  %v3497_v11 = vld [vmem:[%s7161_s1 + $0x1f0] sm:$0xff]  ;;  %v3563_v24 = vld [vmem:[%s7161_s1 + $0x400] sm:$0xff] }
  0xcb   : > { %5112 = vmatprep.subr.bf16.mxu0 %v5111_v1  ;;  %4982 = vmatpush3.bf16.msra.mxu1 %v4979_v45  ;;  %v7261_v45 = vld [vmem:[#allocation41_spill] sm:$0xff] }
  0xcc   : > { %4275 = vmatmul.mubr.f32.gmra.mrb[10].mxu1 %v6369_v41  ;;  %4984 = vmatprep.subr.bf16.mxu1 %v4983_v9 }
  0xcd   : > { %4595 = vmatmul.mubr.f32.gmra.mrb[10].mxu0 %v5955_v13  ;;  %4277 = vmatprep.mubr.f32.mxu1 %v7259_v25  ;;  %v4991_v13 = vpack.c.bf16 %v3498_v23, %v3497_v11  ;;  %v3572_v23 = vld [vmem:[%s7161_s1 + $0x448] sm:$0xff] }
  0xce   : > { %4597 = vmatprep.mubr.f32.mxu0 %v5985_v33  ;;  %5114 = vmatpush3.bf16.msra.mxu0 %v5111_v1  ;;  %v5123_v33 = vpack.c.bf16 %v3564_v0, %v3563_v24  ;;  %v3568_v1 = vld [vmem:[%s7161_s1 + $0x428] sm:$0xff]  ;;  %v7273_v24 = vld [vmem:[#allocation12_spill] sm:$0xff] }
  0xcf   : > { %5116 = vmatprep.subr.bf16.mxu0 %v5115_v8  ;;  %4986 = vmatpush3.bf16.msra.mxu1 %v4983_v9  ;;  %v7269_v9 = vld [vmem:[#allocation8_spill] sm:$0xff]  ;;  %v5131_v54 = vpack.c.bf16 %v3568_v1, %v3567_v39  ;;  %v7276_v39 = vld [vmem:[#allocation15_spill] sm:$0xff] }
  0xd0   : > { %4278 = vmatmul.mubr.f32.gmra.mrb[12].mxu1 %v6394_v31  ;;  %4988 = vmatprep.subr.bf16.mxu1 %v4987_v56  ;;  %v5497_v1 = vld [vmem:[%s5712_s9 + $0x90] sm:$0xff] }
  0xd1   : > { %4598 = vmatmul.mubr.f32.gmra.mrb[12].mxu0 %v5989_v37  ;;  %4280 = vmatprep.mubr.f32.mxu1 %v7260_v2  ;;  %v7262_v37 = vld [vmem:[#allocation42_spill] sm:$0xff] }
  0xd2   : > { %4600 = vmatprep.mubr.f32.mxu0 %v6019_v58  ;;  %5118 = vmatpush3.bf16.msra.mxu0 %v5115_v8  ;;  %v7263_v58 = vld [vmem:[#allocation43_spill] sm:$0xff]  ;;  %v3570_v8 = vld [vmem:[%s7161_s1 + $0x438] sm:$0xff] }
  0xd3   : > { %5120 = vmatprep.subr.bf16.mxu0 %v5119_v36  ;;  %4990 = vmatpush3.bf16.msra.mxu1 %v4987_v56  ;;  %v7270_v56 = vld [vmem:[#allocation9_spill] sm:$0xff]  ;;  %v5135_v11 = vpack.c.bf16 %v3570_v8, %v3569_v16  ;;  %v3578_v16 = vld [vmem:[%s7161_s1 + $0x478] sm:$0xff] }
  0xd4   : > { %4281 = vmatmul.mubr.f32.gmra.mrb[14].mxu1 %v6419_v34  ;;  %4992 = vmatprep.subr.bf16.mxu1 %v4991_v13  ;;  %v7278_v8 = vld [vmem:[#allocation17_spill] sm:$0xff] }
  0xd5   : > { %4601 = vmatmul.mubr.f32.gmra.mrb[14].mxu0 %v6023_v61  ;;  %4283 = vmatprep.mubr.f32.mxu1 %v7261_v45  ;;  %v7264_v61 = vld [vmem:[#allocation31_spill] sm:$0xff] }
  0xd6   : > { %4603 = vmatprep.mubr.f32.mxu0 %v6053_v22  ;;  %5122 = vmatpush3.bf16.msra.mxu0 %v5119_v36  ;;  %v6719_v22 = vld [vmem:[%s5712_s9 + $0x198] sm:$0xff]  ;;  %v7272_v36 = vld [vmem:[#allocation11_spill] sm:$0xff] }
  0xd7   : > { %4994 = vmatpush3.bf16.msra.mxu1 %v4991_v13  ;;  %5124 = vmatprep.subr.bf16.mxu0 %v5123_v33  ;;  %v5494_v13 = vld [vmem:[%s5712_s9 + $0x60] sm:$0xff] }
  0xd8   : > { %4284 = vmatmul.mubr.f32.gmra.mrb[16].mxu1 %v6444_v21 }
  0xd9   : > { %4604 = vmatmul.mubr.f32.gmra.mrb[16].mxu0 %v6057_v27  ;;  %4286 = vmatprep.mubr.f32.mxu1 %v6448_v57  ;;  %v7265_v27 = vld [vmem:[#allocation44_spill] sm:$0xff] }
  0xda   : > { %4606 = vmatprep.mubr.f32.mxu0 %v6090_v52  ;;  %v6726_v52 = vld [vmem:[%s5712_s9 + $0x1a0] sm:$0xff] }
  0xdc   : > { %4287 = vmatmul.mubr.f32.gmra.mrb[18].mxu1 %v6461_v19 }
  0xdd   : > { %4607 = vmatmul.mubr.f32.gmra.mrb[18].mxu0 %v6093_v14  ;;  %4289 = vmatprep.mubr.f32.mxu1 %v6465_v48  ;;  %v3565_v14 = vld [vmem:[%s7161_s1 + $0x410] sm:$0xff] }
  0xde   : > { %4609 = vmatprep.mubr.f32.mxu0 %v6115_v17  ;;  %v3566_v17 = vld [vmem:[%s7161_s1 + $0x418] sm:$0xff] }
  0xe0   : > { %4290 = vmatmul.mubr.f32.gmra.mrb[20].mxu1 %v6476_v5 }
  0xe1   : > { %4610 = vmatmul.mubr.f32.gmra.mrb[20].mxu0 %v6118_v26  ;;  %4292 = vmatprep.mubr.f32.mxu1 %v6480_v46  ;;  %v5490_v26 = vld [vmem:[%s5712_s9 + $0x18] sm:$0xff] }
  0xe2   : > { %4612 = vmatprep.mubr.f32.mxu0 %v6138_v51  ;;  %v7266_v51 = vld [vmem:[#allocation32_spill] sm:$0xff] }
  0xe4   : > { %4293 = vmatmul.mubr.f32.gmra.mrb[22].mxu1 %v6489_v50 }
  0xe5   : > { %4613 = vmatmul.mubr.f32.gmra.mrb[22].mxu0 %v6141_v3  ;;  %4295 = vmatprep.mubr.f32.mxu1 %v6493_v55  ;;  %v7267_v3 = vld [vmem:[#allocation6_spill] sm:$0xff] }
  0xe6   : > { %4615 = vmatprep.mubr.f32.mxu0 %v6160_v38 }
  0xe8   : > { %4296 = vmatmul.mubr.f32.gmra.mrb[24].mxu1 %v6502_v53 }
  0xe9   : > { %4616 = vmatmul.mubr.f32.gmra.mrb[24].mxu0 %v6163_v43  ;;  %4298 = vmatprep.mubr.f32.mxu1 %v6506_v30  ;;  %v5127_v43 = vpack.c.bf16 %v3566_v17, %v3565_v14  ;;  %v7274_v14 = vld [vmem:[#allocation13_spill] sm:$0xff]  ;;  %v5495_v17 = vld [vmem:[%s5712_s9 + $0x78] sm:$0xff] }
  0xea   : > { %4618 = vmatprep.mubr.f32.mxu0 %v6182_v63 }
  0xec   : > { %4299 = vmatmul.mubr.f32.gmra.mrb[26].mxu1 %v7262_v37 }
  0xed   : > { %4619 = vmatmul.mubr.f32.gmra.mrb[26].mxu0 %v6185_v15  ;;  %4301 = vmatprep.mubr.f32.mxu1 %v7263_v58 }
  0xee   : > { %4621 = vmatprep.mubr.f32.mxu0 %v7264_v61 }
  0xf0   : > { %4302 = vmatmul.mubr.f32.gmra.mrb[28].mxu1 %v7265_v27 }
  0xf1   : > { %4622 = vmatmul.mubr.f32.gmra.mrb[28].mxu0 %v7266_v51  ;;  %4304 = vmatprep.mubr.f32.mxu1 %v6532_v44 }
  0xf2   : > { %4624 = vmatprep.mubr.f32.mxu0 %v6719_v22 }
  0xf4   : > { %4305 = vmatmul.mubr.f32.gmra.mrb[30].mxu1 %v6541_v32 }
  0xf5   : > { %4625 = vmatmul.mubr.f32.gmra.mrb[30].mxu0 %v6726_v52  ;;  %4339 = vmatprep.mubr.f32.mxu1 %v5490_v26  ;;  %v7275_v26 = vld [vmem:[#allocation14_spill] sm:$0xff] }
  0xf6   : > { %4659 = vmatprep.mubr.f32.mxu0 %v7267_v3 }
  0xf8   : > { %4340 = vmatmul.mubr.f32.vlgmr.msra.gmra.mrb[0].mxu1 %v5491_v40  ;;  %v3576_v40 = vld [vmem:[%s7161_s1 + $0x468] sm:$0xff] }
  0xf9   : > { %4660 = vmatmul.mubr.f32.vlgmr.msra.gmra.mrb[0].mxu0 %v7268_v42  ;;  %4342 = vmatprep.mubr.f32.mxu1 %v5492_v29  ;;  %v7277_v42 = vld [vmem:[#allocation16_spill] sm:$0xff] }
  0xfa   : > { %5126 = vmatpush3.bf16.msra.mxu0 %v5123_v33  ;;  %4662 = vmatprep.mubr.f32.mxu0 %v7269_v9  ;;  %v3574_v33 = vld [vmem:[%s7161_s1 + $0x458] sm:$0xff] }
  0xfb   : > { %5128 = vmatprep.subr.bf16.mxu0 %v5127_v43  ;;  %v5498_v9 = vld [vmem:[%s5712_s9 + $0x98] sm:$0xff] }
  0xfc   : > { %4343 = vmatmul.mubr.f32.gmra.mrb[2].mxu1 %v6581_v7  ;;  %v3571_v7 = vld [vmem:[%s7161_s1 + $0x440] sm:$0xff] }
  0xfd   : > { %4663 = vmatmul.mubr.f32.gmra.mrb[2].mxu0 %v7270_v56  ;;  %4345 = vmatprep.mubr.f32.mxu1 %v5493_v12  ;;  %v5139_v0 = vpack.c.bf16 %v3572_v23, %v3571_v7  ;;  %v5499_v56 = vld [vmem:[%s5712_s9 + $0xa8] sm:$0xff]  ;;  %v7280_v7 = vld [vmem:[#allocation19_spill] sm:$0xff]  ;;  %v5501_v23 = vld [vmem:[%s5712_s9 + $0xc0] sm:$0xff] }
  0xfe   : > { %4665 = vmatprep.mubr.f32.mxu0 %v7271_v62  ;;  %5130 = vmatpush3.bf16.msra.mxu0 %v5127_v43  ;;  %v5496_v43 = vld [vmem:[%s5712_s9 + $0x80] sm:$0xff]  ;;  %v7279_v12 = vld [vmem:[#allocation18_spill] sm:$0xff] }
  0xff   : > { %5132 = vmatprep.subr.bf16.mxu0 %v5131_v54 }
 0x100   : > { %4346 = vmatmul.mubr.f32.gmra.mrb[4].mxu1 %v6602_v20  ;;  %v3573_v20 = vld [vmem:[%s7161_s1 + $0x450] sm:$0xff] }
 0x101   : > { %4666 = vmatmul.mubr.f32.gmra.mrb[4].mxu0 %v7272_v36  ;;  %4348 = vmatprep.mubr.f32.mxu1 %v5494_v13  ;;  %v5143_v3 = vpack.c.bf16 %v3574_v33, %v3573_v20  ;;  %v7281_v36 = vld [vmem:[#allocation20_spill] sm:$0xff]  ;;  %v5502_v13 = vld [vmem:[%s5712_s9 + $0xc8] sm:$0xff]  ;;  %v5504_v33 = vld [vmem:[%s5712_s9 + $0xe0] sm:$0xff] }
 0x102   : > { %4668 = vmatprep.mubr.f32.mxu0 %v7273_v24  ;;  %5134 = vmatpush3.bf16.msra.mxu0 %v5131_v54  ;;  %v3577_v54 = vld [vmem:[%s7161_s1 + $0x470] sm:$0xff]  ;;  %v7282_v24 = vld [vmem:[#allocation21_spill] sm:$0xff]  ;;  %v7283_v20 = vld [vmem:[#allocation22_spill] sm:$0xff] }
 0x103   : > { %5136 = vmatprep.subr.bf16.mxu0 %v5135_v11  ;;  %v5151_v62 = vpack.c.bf16 %v3578_v16, %v3577_v54  ;;  %v7290_v54 = vld [vmem:[#allocation29_spill] sm:$0xff]  ;;  %v5511_v16 = vld [vmem:[%s5712_s9 + $0x138] sm:$0xff] }
 0x104   : > { %4349 = vmatmul.mubr.f32.gmra.mrb[6].mxu1 %v6621_v10  ;;  %v3575_v10 = vld [vmem:[%s7161_s1 + $0x460] sm:$0xff] }
 0x105   : > { %4669 = vmatmul.mubr.f32.gmra.mrb[6].mxu0 %v7274_v14  ;;  %4351 = vmatprep.mubr.f32.mxu1 %v5495_v17  ;;  %v5147_v29 = vpack.c.bf16 %v3576_v40, %v3575_v10  ;;  %v7284_v14 = vld [vmem:[#allocation23_spill] sm:$0xff]  ;;  %v5507_v10 = vld [vmem:[%s5712_s9 + $0x108] sm:$0xff] }
 0x106   : > { %4671 = vmatprep.mubr.f32.mxu0 %v7275_v26  ;;  %5138 = vmatpush3.bf16.msra.mxu0 %v5135_v11  ;;  %v5500_v11 = vld [vmem:[%s5712_s9 + $0xb0] sm:$0xff]  ;;  %v7285_v26 = vld [vmem:[#allocation24_spill] sm:$0xff]  ;;  %v7287_v40 = vld [vmem:[#allocation26_spill] sm:$0xff] }
 0x107   : > { %5140 = vmatprep.subr.bf16.mxu0 %v5139_v0  ;;  %v5505_v17 = vld [vmem:[%s5712_s9 + $0xf0] sm:$0xff] }
 0x108   : > { %4352 = vmatmul.mubr.f32.gmra.mrb[8].mxu1 %v5496_v43  ;;  %v7286_v43 = vld [vmem:[#allocation25_spill] sm:$0xff] }
 0x109   : > { %4672 = vmatmul.mubr.f32.gmra.mrb[8].mxu0 %v7276_v39  ;;  %4354 = vmatprep.mubr.f32.mxu1 %v5497_v1  ;;  %v5508_v39 = vld [vmem:[%s5712_s9 + $0x110] sm:$0xff] }
 0x10a   : > { %4674 = vmatprep.mubr.f32.mxu0 %v7277_v42  ;;  %5142 = vmatpush3.bf16.msra.mxu0 %v5139_v0  ;;  %v5503_v0 = vld [vmem:[%s5712_s9 + $0xd8] sm:$0xff]  ;;  %v7288_v1 = vld [vmem:[#allocation27_spill] sm:$0xff]  ;;  %v5509_v42 = vld [vmem:[%s5712_s9 + $0x120] sm:$0xff] }
 0x10b   : > { %5144 = vmatprep.subr.bf16.mxu0 %v5143_v3 }
 0x10c   : > { %4355 = vmatmul.mubr.f32.gmra.mrb[10].mxu1 %v5498_v9  ;;  %v5510_v9 = vld [vmem:[%s5712_s9 + $0x128] sm:$0xff] }
 0x10d   : > { %4675 = vmatmul.mubr.f32.gmra.mrb[10].mxu0 %v7278_v8  ;;  %4357 = vmatprep.mubr.f32.mxu1 %v5499_v56  ;;  %v7291_v8 = vld [vmem:[#allocation30_spill] sm:$0xff]  ;;  %v5512_v56 = vld [vmem:[%s5712_s9 + $0x140] sm:$0xff] }
 0x10e   : > { %4677 = vmatprep.mubr.f32.mxu0 %v7279_v12  ;;  %5146 = vmatpush3.bf16.msra.mxu0 %v5143_v3  ;;  %v5506_v3 = vld [vmem:[%s5712_s9 + $0xf8] sm:$0xff]  ;;  %v7292_v12 = vld [vmem:[#allocation33_spill] sm:$0xff] }
 0x10f   : > { %5148 = vmatprep.subr.bf16.mxu0 %v5147_v29 }
 0x110   : > { %4358 = vmatmul.mubr.f32.gmra.mrb[12].mxu1 %v5500_v11  ;;  %v2424_v11 = vrot.slane %v6719_v22, 1 }
 0x111   : > { %4678 = vmatmul.mubr.f32.gmra.mrb[12].mxu0 %v7280_v7  ;;  %4360 = vmatprep.mubr.f32.mxu1 %v5501_v23  ;;  %v2425_v7 = vrot.slane %v6726_v52, 1  ;;  %v6829_v23 = vld [vmem:[%s5712_s9 + $0x1a8] sm:$0x3] }
 0x112   : > { %4680 = vmatprep.mubr.f32.mxu0 %v7281_v36  ;;  %5150 = vmatpush3.bf16.msra.mxu0 %v5147_v29  ;;  %v7289_v29 = vld [vmem:[#allocation28_spill] sm:$0xff] }
 0x113   : > { %5152 = vmatprep.subr.bf16.mxu0 %v5151_v62  ;;  %v5513_v36 = vld [vmem:[%s5712_s9 + $0x158] sm:$0xff] }
 0x114   : > { %4361 = vmatmul.mubr.f32.gmra.mrb[14].mxu1 %v5502_v13  ;;  %v7294_v13 = vld [vmem:[#allocation36_spill] sm:$0xff] }
 0x115   : > { %4681 = vmatmul.mubr.f32.gmra.mrb[14].mxu0 %v7282_v24  ;;  %4363 = vmatprep.mubr.f32.mxu1 %v5503_v0  ;;  %v7295_v24 = vld [vmem:[#allocation37_spill] sm:$0xff]  ;;  %v2427_v0 = vrot.slane %v6829_v23, 1 }
 0x116   : > { %4683 = vmatprep.mubr.f32.mxu0 %v7283_v20  ;;  %5154 = vmatpush3.bf16.msra.mxu0 %v5151_v62  ;;  %v7293_v62 = vld [vmem:[#allocation34_spill] sm:$0xff] }
 0x117   : > { %v7296_v20 = vld [vmem:[#allocation38_spill] sm:$0xff] }
 0x118   : > { %4364 = vmatmul.mubr.f32.gmra.mrb[16].mxu1 %v5504_v33  ;;  %v2428_v33 = vsel %vm341_vm0, %v2425_v7, %v2427_v0 }
 0x119   : > { %4684 = vmatmul.mubr.f32.gmra.mrb[16].mxu0 %v7284_v14  ;;  %4366 = vmatprep.mubr.f32.mxu1 %v5505_v17 }
 0x11a   : > { %4686 = vmatprep.mubr.f32.mxu0 %v7285_v26 }
 0x11c   : > { %4367 = vmatmul.mubr.f32.gmra.mrb[18].mxu1 %v5506_v3 }
 0x11d   : > { %4687 = vmatmul.mubr.f32.gmra.mrb[18].mxu0 %v7286_v43  ;;  %4369 = vmatprep.mubr.f32.mxu1 %v5507_v10 }
 0x11e   : > { %4689 = vmatprep.mubr.f32.mxu0 %v7287_v40 }
 0x120   : > { %4370 = vmatmul.mubr.f32.gmra.mrb[20].mxu1 %v5508_v39 }
 0x121   : > { %4690 = vmatmul.mubr.f32.gmra.mrb[20].mxu0 %v7288_v1  ;;  %4372 = vmatprep.mubr.f32.mxu1 %v5509_v42 }
 0x122   : > { %4692 = vmatprep.mubr.f32.mxu0 %v7289_v29 }
 0x124   : > { %4373 = vmatmul.mubr.f32.gmra.mrb[22].mxu1 %v5510_v9 }
 0x125   : > { %4693 = vmatmul.mubr.f32.gmra.mrb[22].mxu0 %v7290_v54  ;;  %4375 = vmatprep.mubr.f32.mxu1 %v5511_v16 }
 0x126   : > { %4695 = vmatprep.mubr.f32.mxu0 %v7291_v8 }
 0x128   : > { %4376 = vmatmul.mubr.f32.gmra.mrb[24].mxu1 %v5512_v56 }
 0x129   : > { %4696 = vmatmul.mubr.f32.gmra.mrb[24].mxu0 %v7292_v12  ;;  %4378 = vmatprep.mubr.f32.mxu1 %v6160_v38  ;;  %v2426_v38 = vsel %vm341_vm0, %v2424_v11, %v2425_v7 }
 0x12a   : > { %4698 = vmatprep.mubr.f32.mxu0 %v7293_v62 }
 0x12c   : > { %4379 = vmatmul.mubr.f32.gmra.mrb[26].mxu1 %v5513_v36 }
 0x12d   : > { %4699 = vmatmul.mubr.f32.gmra.mrb[26].mxu0 %v7294_v13  ;;  %4381 = vmatprep.mubr.f32.mxu1 %v6182_v63  ;;  %v3096_v63 = vld [vmem:[%s7164_s4] sm:$0xff] }
 0x12e   : > { %4701 = vmatprep.mubr.f32.mxu0 %v7295_v24 }
 0x130   : > { %4382 = vmatmul.mubr.f32.gmra.mrb[28].mxu1 %v6185_v15  ;;  %v3097_v15 = vld [vmem:[%s7164_s4 + $0x8] sm:$0xff] }
 0x131   : > { %4702 = vmatmul.mubr.f32.gmra.mrb[28].mxu0 %v7296_v20  ;;  %4384 = vmatprep.mubr.f32.mxu1 %v7264_v61  ;;  %v6976_v20 = vld [vmem:[%s7162_s2] ss:$0 sm:$0xff] }
 0x132   : > { %4704 = vmatprep.mubr.f32.mxu0 %v2426_v38 }
 0x134   : > { %4385 = vmatmul.mubr.f32.gmra.mrb[30].mxu1 %v7266_v51 }
 0x135   : > { %4705 = vmatmul.mubr.f32.gmra.mrb[30].mxu0 %v2428_v33 }
 0x136   : > { %4739 = vmatprep.mubr.f32.mxu0 %v6271_v4  ;;  %v5155_v4 = vpack.c.bf16 %v3097_v15, %v3096_v63  ;;  %v6981_v15 = vld [vmem:[%s7163_s3] ss:$0 sm:$0xff] }
 0x138   : > { %5156 = vmatprep.subr.bf16.mxu1 %v5155_v4 }
 0x139   : > { %4740 = vmatmul.mubr.f32.vlgmr.msra.gmra.mrb[0].mxu0 %v6293_v47  ;;  %5158 = vmatpush3.bf16.msra.mxu1 %v5155_v4  ;;  %v3098_v47 = vld [vmem:[%s7164_s4 + $0x10] sm:$0xff] }
 0x13a   : > { %4742 = vmatprep.mubr.f32.mxu0 %v6297_v60  ;;  %v3099_v60 = vld [vmem:[%s7164_s4 + $0x18] sm:$0xff] }
 0x13d   : > { %4743 = vmatmul.mubr.f32.gmra.mrb[2].mxu0 %v6319_v59  ;;  %v5159_v59 = vpack.c.bf16 %v3099_v60, %v3098_v47 }
 0x13e   : > { %4745 = vmatprep.mubr.f32.mxu0 %v6323_v28  ;;  %v3100_v28 = vld [vmem:[%s7164_s4 + $0x20] sm:$0xff] }
 0x13f   : > { %5160 = vmatprep.subr.bf16.mxu1 %v5159_v59 }
 0x140   : > { %5162 = vmatpush3.bf16.msra.mxu1 %v5159_v59 }
 0x141   : > { %4746 = vmatmul.mubr.f32.gmra.mrb[4].mxu0 %v6344_v35  ;;  %v3101_v35 = vld [vmem:[%s7164_s4 + $0x28] sm:$0xff] }
 0x142   : > { %4748 = vmatprep.mubr.f32.mxu0 %v6348_v6  ;;  %v5163_v6 = vpack.c.bf16 %v3101_v35, %v3100_v28 }
 0x144   : > { %5164 = vmatprep.subr.bf16.mxu1 %v5163_v6 }
 0x145   : > { %4749 = vmatmul.mubr.f32.gmra.mrb[6].mxu0 %v6369_v41  ;;  %5166 = vmatpush3.bf16.msra.mxu1 %v5163_v6  ;;  %v2705_v41 = vrot.slane %v6719_v22, 2 }
 0x146   : > { %4751 = vmatprep.mubr.f32.mxu0 %v7259_v25  ;;  %v3110_v25 = vld [vmem:[%s7164_s4 + $0x70] sm:$0xff] }
 0x149   : > { %4752 = vmatmul.mubr.f32.gmra.mrb[8].mxu0 %v6394_v31  ;;  %v2706_v31 = vrot.slane %v6726_v52, 2 }
 0x14a   : > { %4754 = vmatprep.mubr.f32.mxu0 %v7260_v2  ;;  %v3111_v2 = vld [vmem:[%s7164_s4 + $0x78] sm:$0xff] }
 0x14d   : > { %4755 = vmatmul.mubr.f32.gmra.mrb[10].mxu0 %v6419_v34  ;;  %v3102_v34 = vld [vmem:[%s7164_s4 + $0x30] sm:$0xff] }
 0x14e   : > { %4757 = vmatprep.mubr.f32.mxu0 %v7261_v45  ;;  %v5183_v45 = vpack.c.bf16 %v3111_v2, %v3110_v25 }
 0x151   : > { %4758 = vmatmul.mubr.f32.gmra.mrb[12].mxu0 %v6444_v21  ;;  %v3103_v21 = vld [vmem:[%s7164_s4 + $0x38] sm:$0xff] }
 0x152   : > { %4760 = vmatprep.mubr.f32.mxu0 %v6448_v57  ;;  %v5167_v57 = vpack.c.bf16 %v3103_v21, %v3102_v34 }
 0x154   : > { %5168 = vmatprep.subr.bf16.mxu1 %v5167_v57 }
 0x155   : > { %4761 = vmatmul.mubr.f32.gmra.mrb[14].mxu0 %v6461_v19  ;;  %v2708_v19 = vrot.slane %v6829_v23, 2  ;;  %5170 = vmatpush3.bf16.msra.mxu1 %v5167_v57 }
 0x156   : > { %4763 = vmatprep.mubr.f32.mxu0 %v6465_v48  ;;  %v2707_v48 = vsel %vm921_vm1, %v2705_v41, %v2706_v31 }
 0x159   : > { %4764 = vmatmul.mubr.f32.gmra.mrb[16].mxu0 %v6476_v5  ;;  %v2709_v5 = vsel %vm921_vm1, %v2706_v31, %v2708_v19 }
 0x15a   : > { %4766 = vmatprep.mubr.f32.mxu0 %v6480_v46  ;;  %v3104_v46 = vld [vmem:[%s7164_s4 + $0x40] sm:$0xff] }
 0x15d   : > { %4767 = vmatmul.mubr.f32.gmra.mrb[18].mxu0 %v6489_v50  ;;  %v3105_v50 = vld [vmem:[%s7164_s4 + $0x48] sm:$0xff] }
 0x15e   : > { %4769 = vmatprep.mubr.f32.mxu0 %v6493_v55  ;;  %v3106_v55 = vld [vmem:[%s7164_s4 + $0x50] sm:$0xff] }
 0x161   : > { %4770 = vmatmul.mubr.f32.gmra.mrb[20].mxu0 %v6502_v53  ;;  %v3107_v53 = vld [vmem:[%s7164_s4 + $0x58] sm:$0xff] }
 0x162   : > { %4772 = vmatprep.mubr.f32.mxu0 %v6506_v30  ;;  %v5175_v30 = vpack.c.bf16 %v3107_v53, %v3106_v55 }
 0x165   : > { %4773 = vmatmul.mubr.f32.gmra.mrb[22].mxu0 %v7262_v37 }
 0x166   : > { %4775 = vmatprep.mubr.f32.mxu0 %v7263_v58 }
 0x169   : > { %4776 = vmatmul.mubr.f32.gmra.mrb[24].mxu0 %v7265_v27 }
 0x16a   : > { %4778 = vmatprep.mubr.f32.mxu0 %v6532_v44  ;;  %v3108_v44 = vld [vmem:[%s7164_s4 + $0x60] sm:$0xff] }
 0x16d   : > { %4779 = vmatmul.mubr.f32.gmra.mrb[26].mxu0 %v6541_v32  ;;  %v3109_v32 = vld [vmem:[%s7164_s4 + $0x68] sm:$0xff] }
 0x16e   : > { %4781 = vmatprep.mubr.f32.mxu0 %v6547_v49  ;;  %v5171_v49 = vpack.c.bf16 %v3105_v50, %v3104_v46 }
 0x170   : > { %5172 = vmatprep.subr.bf16.mxu1 %v5171_v49 }
 0x171   : > { %4782 = vmatmul.mubr.f32.gmra.mrb[28].mxu0 %v6555_v18  ;;  %5174 = vmatpush3.bf16.msra.mxu1 %v5171_v49  ;;  %v5179_v18 = vpack.c.bf16 %v3109_v32, %v3108_v44 }
 0x172   : > { %4784 = vmatprep.mubr.f32.mxu0 %v2707_v48  ;;  %5176 = vmatprep.subr.bf16.mxu1 %v5175_v30 }
 0x175   : > { %4785 = vmatmul.mubr.f32.gmra.mrb[30].mxu0 %v2709_v5  ;;  %5178 = vmatpush3.bf16.msra.mxu1 %v5175_v30 }
 0x176   : > { %5180 = vmatprep.subr.bf16.mxu1 %v5179_v18 }
 0x179   : > { %5182 = vmatpush3.bf16.msra.mxu1 %v5179_v18 }
 0x17a   : > { %5184 = vmatprep.subr.bf16.mxu1 %v5183_v45 }
 0x17d   : > { %5186 = vmatpush3.bf16.msra.mxu1 %v5183_v45 }
 0x1cb   : > { %v4341_v37 = vpop.f32.mrb[0].mxu1 }
 0x1cc   : > { %v1391_v58 = vpop.f32.mrb[1].mxu1 }
 0x1cf   : > { %v4344_v61 = vpop.f32.mrb[2].mxu1 }
 0x1d0   : > { %v1401_v22 = vpop.f32.mrb[3].mxu1 }
 0x1d3   : > { %v4347_v27 = vpop.f32.mrb[4].mxu1 }
 0x1d4   : > { %v1411_v51 = vpop.f32.mrb[5].mxu1 }
 0x1d7   : > { %v4350_v52 = vpop.f32.mrb[6].mxu1 }
 0x1d8   : > { %v1421_v14 = vpop.f32.mrb[7].mxu1 }
 0x1db   : > { %v6925_v17 = vpop.f32.mrb[8].mxu1 }
 0x1dc   : > { %v6927_v26 = vpop.f32.mrb[9].mxu1 }
 0x1df   : > { %v6929_v3 = vpop.f32.mrb[10].mxu1 }
 0x1e0   : > { %v6931_v43 = vpop.f32.mrb[11].mxu1 }
 0x1e3   : > { %v6933_v10 = vpop.f32.mrb[12].mxu1 }
 0x1e4   : > { %v6935_v40 = vpop.f32.mrb[13].mxu1 }
 0x1e7   : > { %v6937_v39 = vpop.f32.mrb[14].mxu1 }
 0x1e8   : > { %v6939_v1 = vpop.f32.mrb[15].mxu1 }
 0x1eb   : > { %v6941_v42 = vpop.f32.mrb[16].mxu1 }
 0x1ec   : > { %v6943_v29 = vpop.f32.mrb[17].mxu1 }
 0x1ef   : > { %v6945_v9 = vpop.f32.mrb[18].mxu1 }
 0x1f0   : > { %v6947_v54 = vpop.f32.mrb[19].mxu1 }
 0x1f3   : > { %v6949_v16 = vpop.f32.mrb[20].mxu1 }
 0x1f4   : > { %v6951_v8 = vpop.f32.mrb[21].mxu1 }
 0x1f7   : > { %v6953_v56 = vpop.f32.mrb[22].mxu1 }
 0x1f8   : > { %v6955_v12 = vpop.f32.mrb[23].mxu1 }
 0x1fb   : > { %v6957_v62 = vpop.f32.mrb[24].mxu1 }
 0x1fc   : > { %v6959_v11 = vpop.f32.mrb[25].mxu1 }
 0x1ff   : > { %v6961_v7 = vpop.f32.mrb[26].mxu1 }
 0x200   : > { %v6963_v23 = vpop.f32.mrb[27].mxu1 }
 0x203   : > { %v6965_v36 = vpop.f32.mrb[28].mxu1 }
 0x204   : > { %v6967_v13 = vpop.f32.mrb[29].mxu1 }
 0x207   : > { %v6969_v24 = vpop.f32.mrb[30].mxu1 }
 0x208   : > { %v6971_v0 = vpop.f32.mrb[31].mxu1 }
 0x20c   : > { %v4741_v38 = vpop.f32.mrb[0].mxu0 }
 0x20d   : > { %v5187_v33 = vadd.f32 %v4741_v38, %v4341_v37  ;;  %v2795_v63 = vpop.f32.mrb[1].mxu0 }
 0x20e   : > { %v5188_v4 = vadd.f32 %v2795_v63, %v1391_v58 }
 0x20f   : > { %v2994_v47 = vmul.f32 %v5187_v33, %v6976_v20 }
 0x210   : > { %v2993_v60 = vmul.f32 %v5188_v4, %v6976_v20  ;;  %v4744_v59 = vpop.f32.mrb[2].mxu0 }
 0x211   : > { %v3033_v28 = vadd.f32 %v6981_v15, %v2994_v47  ;;  %v5189_v35 = vadd.f32 %v4744_v59, %v4344_v61  ;;  %v2805_v6 = vpop.f32.mrb[3].mxu0 }
 0x212   : > { %v5190_v41 = vadd.f32 %v2805_v6, %v1401_v22  ;;  %v3032_v31 = vadd.f32 %v6981_v15, %v2993_v60 }
 0x213   : > { %v2996_v34 = vmul.f32 %v5189_v35, %v6976_v20  ;;  %v3065_v48 = vmax.f32 %v3033_v28, 0.0 }
 0x214   : > { %v2995_v21 = vmul.f32 %v5190_v41, %v6976_v20  ;;  %v4747_v57 = vpop.f32.mrb[4].mxu0  ;;  %v3064_v19 = vmax.f32 %v3032_v31, 0.0 }
 0x215   : > { %v5191_v5 = vadd.f32 %v4747_v57, %v4347_v27  ;;  %v2815_v46 = vpop.f32.mrb[5].mxu0  ;;  %v3035_v50 = vadd.f32 %v6981_v15, %v2996_v34 }
 0x216   : > { %v5192_v49 = vadd.f32 %v2815_v46, %v1411_v51  ;;  %4819 = vmatprep.mubr.f32.mxu1 %v3064_v19  ;;  %v3034_v55 = vadd.f32 %v6981_v15, %v2995_v21 }
 0x217   : > { %v2998_v53 = vmul.f32 %v5191_v5, %v6976_v20  ;;  %4820 = vmatmul.mubr.f32.vlgmr.msra.gmra.mrb[32].mxu1 %v3065_v48  ;;  %v3067_v2 = vmax.f32 %v3035_v50, 0.0 }
 0x218   : > { %v2997_v30 = vmul.f32 %v5192_v49, %v6976_v20  ;;  %v4750_v44 = vpop.f32.mrb[6].mxu0  ;;  %v3066_v32 = vmax.f32 %v3034_v55, 0.0 }
 0x219   : > { %v5193_v18 = vadd.f32 %v4750_v44, %v4350_v52  ;;  %v2825_v25 = vpop.f32.mrb[7].mxu0  ;;  %v3037_v45 = vadd.f32 %v6981_v15, %v2998_v53 }
 0x21a   : > { %v5194_v37 = vadd.f32 %v2825_v25, %v1421_v14  ;;  %4822 = vmatprep.mubr.f32.mxu1 %v3066_v32  ;;  %v3036_v58 = vadd.f32 %v6981_v15, %v2997_v30 }
 0x21b   : > { %v3000_v61 = vmul.f32 %v5193_v18, %v6976_v20  ;;  %4823 = vmatmul.mubr.f32.gmra.mrb[34].mxu1 %v3067_v2  ;;  %v3069_v63 = vmax.f32 %v3037_v45, 0.0 }
 0x21c   : > { %v2999_v22 = vmul.f32 %v5194_v37, %v6976_v20  ;;  %v4753_v27 = vpop.f32.mrb[8].mxu0  ;;  %v3068_v51 = vmax.f32 %v3036_v58, 0.0 }
 0x21d   : > { %v5195_v38 = vadd.f32 %v4753_v27, %v6925_v17  ;;  %v2835_v33 = vpop.f32.mrb[9].mxu0  ;;  %v3039_v52 = vadd.f32 %v6981_v15, %v3000_v61 }
 0x21e   : > { %v5196_v4 = vadd.f32 %v2835_v33, %v6927_v26  ;;  %4825 = vmatprep.mubr.f32.mxu1 %v3068_v51  ;;  %v3038_v14 = vadd.f32 %v6981_v15, %v2999_v22 }
 0x21f   : > { %v3002_v47 = vmul.f32 %v5195_v38, %v6976_v20  ;;  %4826 = vmatmul.mubr.f32.gmra.mrb[36].mxu1 %v3069_v63  ;;  %v3071_v17 = vmax.f32 %v3039_v52, 0.0 }
 0x220   : > { %v3001_v60 = vmul.f32 %v5196_v4, %v6976_v20  ;;  %v4756_v59 = vpop.f32.mrb[10].mxu0  ;;  %v3070_v28 = vmax.f32 %v3038_v14, 0.0 }
 0x221   : > { %v5197_v35 = vadd.f32 %v4756_v59, %v6929_v3  ;;  %v2845_v6 = vpop.f32.mrb[11].mxu0  ;;  %v3041_v41 = vadd.f32 %v6981_v15, %v3002_v47 }
 0x222   : > { %v5198_v31 = vadd.f32 %v2845_v6, %v6931_v43  ;;  %4828 = vmatprep.mubr.f32.mxu1 %v3070_v28  ;;  %v3040_v26 = vadd.f32 %v6981_v15, %v3001_v60 }
 0x223   : > { %v3004_v34 = vmul.f32 %v5197_v35, %v6976_v20  ;;  %4829 = vmatmul.mubr.f32.gmra.mrb[38].mxu1 %v3071_v17  ;;  %v3073_v3 = vmax.f32 %v3041_v41, 0.0 }
 0x224   : > { %v3003_v21 = vmul.f32 %v5198_v31, %v6976_v20  ;;  %v4759_v57 = vpop.f32.mrb[12].mxu0  ;;  %v3072_v19 = vmax.f32 %v3040_v26, 0.0 }
 0x225   : > { %v5199_v48 = vadd.f32 %v4759_v57, %v6933_v10  ;;  %v2855_v5 = vpop.f32.mrb[13].mxu0  ;;  %v3043_v46 = vadd.f32 %v6981_v15, %v3004_v34 }
 0x226   : > { %v5200_v50 = vadd.f32 %v2855_v5, %v6935_v40  ;;  %4831 = vmatprep.mubr.f32.mxu1 %v3072_v19  ;;  %v3042_v43 = vadd.f32 %v6981_v15, %v3003_v21 }
 0x227   : > { %v3006_v49 = vmul.f32 %v5199_v48, %v6976_v20  ;;  %4832 = vmatmul.mubr.f32.gmra.mrb[40].mxu1 %v3073_v3  ;;  %v3075_v10 = vmax.f32 %v3043_v46, 0.0 }
 0x228   : > { %v3005_v55 = vmul.f32 %v5200_v50, %v6976_v20  ;;  %v4762_v53 = vpop.f32.mrb[14].mxu0  ;;  %v3074_v30 = vmax.f32 %v3042_v43, 0.0 }
 0x229   : > { %v5201_v44 = vadd.f32 %v4762_v53, %v6937_v39  ;;  %v2865_v32 = vpop.f32.mrb[15].mxu0  ;;  %v3045_v18 = vadd.f32 %v6981_v15, %v3006_v49 }
 0x22a   : > { %v5202_v25 = vadd.f32 %v2865_v32, %v6939_v1  ;;  %4834 = vmatprep.mubr.f32.mxu1 %v3074_v30  ;;  %v3044_v40 = vadd.f32 %v6981_v15, %v3005_v55 }
 0x22b   : > { %v3008_v2 = vmul.f32 %v5201_v44, %v6976_v20  ;;  %4835 = vmatmul.mubr.f32.gmra.mrb[42].mxu1 %v3075_v10  ;;  %v3077_v39 = vmax.f32 %v3045_v18, 0.0 }
 0x22c   : > { %v3007_v45 = vmul.f32 %v5202_v25, %v6976_v20  ;;  %v4765_v37 = vpop.f32.mrb[16].mxu0  ;;  %v3076_v58 = vmax.f32 %v3044_v40, 0.0 }
 0x22d   : > { %v5203_v61 = vadd.f32 %v4765_v37, %v6941_v42  ;;  %v2875_v22 = vpop.f32.mrb[17].mxu0  ;;  %v3047_v27 = vadd.f32 %v6981_v15, %v3008_v2 }
 0x22e   : > { %v5204_v51 = vadd.f32 %v2875_v22, %v6943_v29  ;;  %4837 = vmatprep.mubr.f32.mxu1 %v3076_v58  ;;  %v3046_v1 = vadd.f32 %v6981_v15, %v3007_v45 }
 0x22f   : > { %v3010_v38 = vmul.f32 %v5203_v61, %v6976_v20  ;;  %4838 = vmatmul.mubr.f32.gmra.mrb[44].mxu1 %v3077_v39  ;;  %v3079_v42 = vmax.f32 %v3047_v27, 0.0 }
 0x230   : > { %v3009_v33 = vmul.f32 %v5204_v51, %v6976_v20  ;;  %v4768_v63 = vpop.f32.mrb[18].mxu0  ;;  %v3078_v52 = vmax.f32 %v3046_v1, 0.0 }
 0x231   : > { %v5205_v4 = vadd.f32 %v4768_v63, %v6945_v9  ;;  %v2885_v14 = vpop.f32.mrb[19].mxu0  ;;  %v3049_v47 = vadd.f32 %v6981_v15, %v3010_v38 }
 0x232   : > { %v5206_v60 = vadd.f32 %v2885_v14, %v6947_v54  ;;  %4840 = vmatprep.mubr.f32.mxu1 %v3078_v52  ;;  %v3048_v29 = vadd.f32 %v6981_v15, %v3009_v33 }
 0x233   : > { %v3012_v59 = vmul.f32 %v5205_v4, %v6976_v20  ;;  %4841 = vmatmul.mubr.f32.gmra.mrb[46].mxu1 %v3079_v42  ;;  %v3081_v9 = vmax.f32 %v3049_v47, 0.0 }
 0x234   : > { %v3011_v28 = vmul.f32 %v5206_v60, %v6976_v20  ;;  %v4771_v35 = vpop.f32.mrb[20].mxu0  ;;  %v3080_v6 = vmax.f32 %v3048_v29, 0.0 }
 0x235   : > { %v5207_v17 = vadd.f32 %v4771_v35, %v6949_v16  ;;  %v2895_v41 = vpop.f32.mrb[21].mxu0  ;;  %v3051_v31 = vadd.f32 %v6981_v15, %v3012_v59 }
 0x236   : > { %v5208_v26 = vadd.f32 %v2895_v41, %v6951_v8  ;;  %4843 = vmatprep.mubr.f32.mxu1 %v3080_v6  ;;  %v3050_v54 = vadd.f32 %v6981_v15, %v3011_v28 }
 0x237   : > { %v3014_v34 = vmul.f32 %v5207_v17, %v6976_v20  ;;  %4844 = vmatmul.mubr.f32.gmra.mrb[48].mxu1 %v3081_v9  ;;  %v3083_v16 = vmax.f32 %v3051_v31, 0.0 }
 0x238   : > { %v3013_v21 = vmul.f32 %v5208_v26, %v6976_v20  ;;  %v4774_v57 = vpop.f32.mrb[22].mxu0  ;;  %v3082_v19 = vmax.f32 %v3050_v54, 0.0 }
 0x239   : > { %v5209_v48 = vadd.f32 %v4774_v57, %v6953_v56  ;;  %v2905_v5 = vpop.f32.mrb[23].mxu0  ;;  %v3053_v3 = vadd.f32 %v6981_v15, %v3014_v34 }
 0x23a   : > { %v5210_v46 = vadd.f32 %v2905_v5, %v6955_v12  ;;  %4846 = vmatprep.mubr.f32.mxu1 %v3082_v19  ;;  %v3052_v8 = vadd.f32 %v6981_v15, %v3013_v21 }
 0x23b   : > { %v3016_v50 = vmul.f32 %v5209_v48, %v6976_v20  ;;  %4847 = vmatmul.mubr.f32.gmra.mrb[50].mxu1 %v3083_v16  ;;  %v3085_v56 = vmax.f32 %v3053_v3, 0.0 }
 0x23c   : > { %v3015_v43 = vmul.f32 %v5210_v46, %v6976_v20  ;;  %v4777_v49 = vpop.f32.mrb[24].mxu0  ;;  %v3084_v55 = vmax.f32 %v3052_v8, 0.0 }
 0x23d   : > { %v5211_v53 = vadd.f32 %v4777_v49, %v6957_v62  ;;  %v2915_v30 = vpop.f32.mrb[25].mxu0  ;;  %v3055_v44 = vadd.f32 %v6981_v15, %v3016_v50 }
 0x23e   : > { %v5212_v32 = vadd.f32 %v2915_v30, %v6959_v11  ;;  %4849 = vmatprep.mubr.f32.mxu1 %v3084_v55  ;;  %v3054_v12 = vadd.f32 %v6981_v15, %v3015_v43 }
 0x23f   : > { %v3018_v10 = vmul.f32 %v5211_v53, %v6976_v20  ;;  %4850 = vmatmul.mubr.f32.gmra.mrb[52].mxu1 %v3085_v56  ;;  %v3087_v62 = vmax.f32 %v3055_v44, 0.0 }
 0x240   : > { %v3017_v18 = vmul.f32 %v5212_v32, %v6976_v20  ;;  %v4780_v25 = vpop.f32.mrb[26].mxu0  ;;  %v3086_v40 = vmax.f32 %v3054_v12, 0.0 }
 0x241   : > { %v5213_v2 = vadd.f32 %v4780_v25, %v6961_v7  ;;  %v2925_v45 = vpop.f32.mrb[27].mxu0  ;;  %v3057_v37 = vadd.f32 %v6981_v15, %v3018_v10 }
 0x242   : > { %v5214_v58 = vadd.f32 %v2925_v45, %v6963_v23  ;;  %4852 = vmatprep.mubr.f32.mxu1 %v3086_v40  ;;  %v3056_v11 = vadd.f32 %v6981_v15, %v3017_v18 }
 0x243   : > { %v3020_v61 = vmul.f32 %v5213_v2, %v6976_v20  ;;  %4853 = vmatmul.mubr.f32.gmra.mrb[54].mxu1 %v3087_v62  ;;  %v3089_v7 = vmax.f32 %v3057_v37, 0.0 }
 0x244   : > { %v3019_v22 = vmul.f32 %v5214_v58, %v6976_v20  ;;  %v4783_v39 = vpop.f32.mrb[28].mxu0  ;;  %v3088_v27 = vmax.f32 %v3056_v11, 0.0 }
 0x245   : > { %v5215_v51 = vadd.f32 %v4783_v39, %v6965_v36  ;;  %v2935_v1 = vpop.f32.mrb[29].mxu0  ;;  %v3059_v38 = vadd.f32 %v6981_v15, %v3020_v61 }
 0x246   : > { %v5216_v33 = vadd.f32 %v2935_v1, %v6967_v13  ;;  %4855 = vmatprep.mubr.f32.mxu1 %v3088_v27  ;;  %v3058_v23 = vadd.f32 %v6981_v15, %v3019_v22 }
 0x247   : > { %v3022_v63 = vmul.f32 %v5215_v51, %v6976_v20  ;;  %4856 = vmatmul.mubr.f32.gmra.mrb[56].mxu1 %v3089_v7  ;;  %v3091_v36 = vmax.f32 %v3059_v38, 0.0 }
 0x248   : > { %v3021_v52 = vmul.f32 %v5216_v33, %v6976_v20  ;;  %v4786_v4 = vpop.f32.mrb[30].mxu0  ;;  %v3090_v14 = vmax.f32 %v3058_v23, 0.0 }
 0x249   : > { %v5217_v42 = vadd.f32 %v4786_v4, %v6969_v24  ;;  %v2945_v47 = vpop.f32.mrb[31].mxu0  ;;  %v3061_v60 = vadd.f32 %v6981_v15, %v3022_v63 }
 0x24a   : > { %v5218_v29 = vadd.f32 %v2945_v47, %v6971_v0  ;;  %4858 = vmatprep.mubr.f32.mxu1 %v3090_v14  ;;  %v3060_v13 = vadd.f32 %v6981_v15, %v3021_v52 }
 0x24b   : > { %v3024_v59 = vmul.f32 %v5217_v42, %v6976_v20  ;;  %4859 = vmatmul.mubr.f32.gmra.mrb[58].mxu1 %v3091_v36  ;;  %v3093_v6 = vmax.f32 %v3061_v60, 0.0 }
 0x24c   : > { %v3023_v28 = vmul.f32 %v5218_v29, %v6976_v20  ;;  %v3092_v35 = vmax.f32 %v3060_v13, 0.0 }
 0x24d   : > { %v3063_v24 = vadd.f32 %v6981_v15, %v3024_v59 }
 0x24e   : > { %4861 = vmatprep.mubr.f32.mxu1 %v3092_v35  ;;  %v3062_v17 = vadd.f32 %v6981_v15, %v3023_v28 }
 0x24f   : > { %4862 = vmatmul.mubr.f32.gmra.mrb[60].mxu1 %v3093_v6  ;;  %v3095_v0 = vmax.f32 %v3063_v24, 0.0 }
 0x250   : > { %v3094_v41 = vmax.f32 %v3062_v17, 0.0 }
 0x252   : > { %4864 = vmatprep.mubr.f32.mxu1 %v3094_v41 }
 0x253   : > { %4865 = vmatmul.mubr.f32.gmra.mrb[62].mxu1 %v3095_v0 }
 0x2ea   : > { %v4821_v9 = vpop.f32.mrb[32].mxu1 }
 0x2eb   : > { %3338 = vst [vmem:[%s7074_s16 + $0x8] sm:$0xff] %v4821_v9  ;;  %v3178_v20 = vpop.f32.mrb[33].mxu1 }
 0x2ec   : > { %3337 = vst [vmem:[%s7074_s16] sm:$0xff] %v3178_v20 }
 0x2ee   : > { %v4824_v15 = vpop.f32.mrb[34].mxu1 }
 0x2ef   : > { %3340 = vst [vmem:[%s7074_s16 + $0x18] sm:$0xff] %v4824_v15  ;;  %v3188_v31 = vpop.f32.mrb[35].mxu1 }
 0x2f0   : > { %3339 = vst [vmem:[%s7074_s16 + $0x10] sm:$0xff] %v3188_v31 }
 0x2f2   : > { %v4827_v26 = vpop.f32.mrb[36].mxu1 }
 0x2f3   : > { %3342 = vst [vmem:[%s7074_s16 + $0x28] sm:$0xff] %v4827_v26  ;;  %v3198_v54 = vpop.f32.mrb[37].mxu1 }
 0x2f4   : > { %3341 = vst [vmem:[%s7074_s16 + $0x20] sm:$0xff] %v3198_v54 }
 0x2f6   : > { %v4830_v34 = vpop.f32.mrb[38].mxu1 }
 0x2f7   : > { %3344 = vst [vmem:[%s7074_s16 + $0x38] sm:$0xff] %v4830_v34  ;;  %v3208_v21 = vpop.f32.mrb[39].mxu1 }
 0x2f8   : > { %3343 = vst [vmem:[%s7074_s16 + $0x30] sm:$0xff] %v3208_v21 }
 0x2fa   : > { %v4833_v57 = vpop.f32.mrb[40].mxu1 }
 0x2fb   : > { %3346 = vst [vmem:[%s7074_s16 + $0x48] sm:$0xff] %v4833_v57  ;;  %v3218_v19 = vpop.f32.mrb[41].mxu1 }
 0x2fc   : > { %3345 = vst [vmem:[%s7074_s16 + $0x40] sm:$0xff] %v3218_v19 }
 0x2fe   : > { %v4836_v48 = vpop.f32.mrb[42].mxu1 }
 0x2ff   : > { %3348 = vst [vmem:[%s7074_s16 + $0x58] sm:$0xff] %v4836_v48  ;;  %v3228_v5 = vpop.f32.mrb[43].mxu1 }
 0x300   : > { %3347 = vst [vmem:[%s7074_s16 + $0x50] sm:$0xff] %v3228_v5 }
 0x302   : > { %v4839_v16 = vpop.f32.mrb[44].mxu1 }
 0x303   : > { %3350 = vst [vmem:[%s7074_s16 + $0x68] sm:$0xff] %v4839_v16  ;;  %v3238_v3 = vpop.f32.mrb[45].mxu1 }
 0x304   : > { %3349 = vst [vmem:[%s7074_s16 + $0x60] sm:$0xff] %v3238_v3 }
 0x306   : > { %v4842_v46 = vpop.f32.mrb[46].mxu1 }
 0x307   : > { %3352 = vst [vmem:[%s7074_s16 + $0x78] sm:$0xff] %v4842_v46  ;;  %v3248_v8 = vpop.f32.mrb[47].mxu1 }
 0x308   : > { %3351 = vst [vmem:[%s7074_s16 + $0x70] sm:$0xff] %v3248_v8 }
 0x30a   : > { %v4845_v50 = vpop.f32.mrb[48].mxu1 }
 0x30b   : > { %3354 = vst [vmem:[%s7074_s16 + $0x88] sm:$0xff] %v4845_v50  ;;  %v3258_v43 = vpop.f32.mrb[49].mxu1 }
 0x30c   : > { %3353 = vst [vmem:[%s7074_s16 + $0x80] sm:$0xff] %v3258_v43 }
 0x30e   : > { %v4848_v49 = vpop.f32.mrb[50].mxu1 }
 0x30f   : > { %3356 = vst [vmem:[%s7074_s16 + $0x98] sm:$0xff] %v4848_v49  ;;  %v3268_v55 = vpop.f32.mrb[51].mxu1 }
 0x310   : > { %3355 = vst [vmem:[%s7074_s16 + $0x90] sm:$0xff] %v3268_v55 }
 0x312   : > { %v4851_v53 = vpop.f32.mrb[52].mxu1 }
 0x313   : > { %3358 = vst [vmem:[%s7074_s16 + $0xa8] sm:$0xff] %v4851_v53  ;;  %v3278_v30 = vpop.f32.mrb[53].mxu1 }
 0x314   : > { %3357 = vst [vmem:[%s7074_s16 + $0xa0] sm:$0xff] %v3278_v30 }
 0x316   : > { %v4854_v56 = vpop.f32.mrb[54].mxu1 }
 0x317   : > { %3360 = vst [vmem:[%s7074_s16 + $0xb8] sm:$0xff] %v4854_v56  ;;  %v3288_v44 = vpop.f32.mrb[55].mxu1 }
 0x318   : > { %3359 = vst [vmem:[%s7074_s16 + $0xb0] sm:$0xff] %v3288_v44 }
 0x31a   : > { %v4857_v32 = vpop.f32.mrb[56].mxu1 }
 0x31b   : > { %3362 = vst [vmem:[%s7074_s16 + $0xc8] sm:$0xff] %v4857_v32  ;;  %v3298_v12 = vpop.f32.mrb[57].mxu1 }
 0x31c   : > { %3361 = vst [vmem:[%s7074_s16 + $0xc0] sm:$0xff] %v3298_v12 }
 0x31e   : > { %v4860_v10 = vpop.f32.mrb[58].mxu1 }
 0x31f   : > { %3364 = vst [vmem:[%s7074_s16 + $0xd8] sm:$0xff] %v4860_v10  ;;  %v3308_v18 = vpop.f32.mrb[59].mxu1 }
 0x320   : > { %3363 = vst [vmem:[%s7074_s16 + $0xd0] sm:$0xff] %v3308_v18 }
 0x322   : > { %v4863_v25 = vpop.f32.mrb[60].mxu1 }
 0x323   : > { %3366 = vst [vmem:[%s7074_s16 + $0xe8] sm:$0xff] %v4863_v25  ;;  %v3318_v40 = vpop.f32.mrb[61].mxu1 }
 0x324   : > { %3365 = vst [vmem:[%s7074_s16 + $0xe0] sm:$0xff] %v3318_v40 }
 0x326   : > { %v4866_v2 = vpop.f32.mrb[62].mxu1 }
 0x327   : > { %3368 = vst [vmem:[%s7074_s16 + $0xf8] sm:$0xff] %v4866_v2  ;;  %v3328_v45 = vpop.f32.mrb[63].mxu1 }
 0x328   : > { %3367 = vst [vmem:[%s7074_s16 + $0xf0] sm:$0xff] %v3328_v45 }
 0x329   : > { %5527 = shalt.err (!%p5524_p3)
}
 0x32a   : > { %s5528_s9 = scalar_lea.hbm %s7111_s30, 4096  ;;  %s5532_s13 = scalar_lea.hbm %s7165_s5, 8192 }
 0x32b   : > { %p5529_p4 = scmp.ne.s32.totalorder %s7111_s30, %s5528_s9  ;;  %p5533_p9 = scmp.lt.u32.totalorder %s7111_s30, %s7165_s5 }
 0x32c   : > { %p5534_p10 = scmp.lt.u32.totalorder %s5532_s13, %s5528_s9  ;;  %p5536_p12 = scmp.lt.u32.totalorder %s5528_s9, %s7111_s30 }
 0x32d   : > { %p5530_p7 = pnand %p5529_p4, %p5649_p5 }
 0x32e   : > { %p5535_p11 = por %p5534_p10, %p5533_p9 }
 0x32f   : > { %p5531_p8 = pneg %p5530_p7 }
 0x330   : > { %p5537_p13 = por %p5536_p12, %p5535_p11 }
 0x332   : > { %p5538_p0 = pnand %p5537_p13, %p5531_p8 }
 0x334   : > { %5541 = shalt.err (!%p5538_p0)
}
 0x335   : > { %s5579_s16 = smov 128   ;;  %s5580_s17 = smov 8  }
 0x336   : > { %5444 = dma.vmem_to_hbm [thread:$0]  (%p5649_p5), %s7113_s23, 4096, %s7111_s30, %s7119_s22, %s5579_s16, %s5579_s16, %s5580_s17  }
 0x337 PF: > { %p5450_p1 = scmp.ge.s32.totalorder %s5576_s21, 2  ;;  %s3398_s25 = sand.u32 1, %s5564_s18  }
 0x338   : > { %s3399_s26 = scalar_lea.sflag [#allocation3], %s3398_s25 }
 0x339   : > { %p5447_p2 = pnand %p5450_p1, %p5653_p6 }
 0x33b   : > { %5559 = dma.done.wait (!%p5447_p2), %s3399_s26, 4096  }
 0x33c   : > { %5561 = vsyncadd (!%p5447_p2), %s3399_s26, 4294963200  ;;  %p15_p3 = scmp.ge.s32.totalorder %s5636_s24, 4   ;;  %s7297_s18 = smov %s5568_s19 }
 0x33d   : > { %s7298_s19 = smov %s5572_s20  ;;  %s7299_s20 = smov %s5647_s27 }
 0x33e   : > { %s7300_s21 = smov %s5636_s24  ;;  %17 = sbr.rel (!%p15_p3) target bundleno = 3 (0x3), region = 83 }
 0x345   :  { %3404 = vsyncpa [#allocation3], 1 }
 0x346   :  { %3406 = vsyncpa [#allocation3 + $0x1], 1 }

</bundles_post_ra>
